<compile_context>
chip_gen: v5e
topology: v5e:2x2
jax: 0.10.0
libtpu: 0.0.40
codegen_flags: <defaults>
</compile_context>

<pallas_src>
import jax
import jax.numpy as jnp
from jax import lax
from jax.experimental import pallas as pl
from jax.experimental.pallas import tpu as pltpu

# --- physical constants from the PyTorch module -----------------------------
K1 = 0.035
K2 = 0.045
L1 = 0.3
M2 = 1.0
A1 = K1 + K2 + M2 * L1 ** 2        # 0.17
D2 = 0.16
A2 = M2 * L1 * D2                  # 0.048
A3 = K2                            # 0.045

# Damping matrix baked as compile-time constants inside the kernel.
B00, B01, B11 = 0.05, 0.025, 0.05
# Kept only for the pure-JAX reference (mirrors the torch.tensor B).
B_MAT = jnp.array([[B00, B01], [B01, B11]], dtype=jnp.float32)

LANES = 128            # arms per lane row
CHUNK_ROWS = 32        # sublane rows per inner compute chunk (4 vregs / component)
MAX_BLOCK_ROWS = 256   # sublane rows per grid step (up to 32768 arms, ~1.25 MiB in+out)


def make_arm_kernel(num_steps: int, block_rows: int, chunk_rows: int):
    """Kernel over a (4, block_rows, 128) dense state block, fusing `num_steps` Euler steps.

    The block is processed in chunk_rows-sublane chunks so the per-step carry stays
    register-resident (no VMEM spills) while the DMA tile stays large.
    """
    n_steps = int(num_steps)
    n_chunks = block_rows // chunk_rows
    unroll = 2 if n_steps > 1 else 1   # small partial unroll; keeps vreg pressure modest

    def kernel(dt_ref, x_ref, u_ref, o_ref):
        dt = dt_ref[0]                 # runtime scalar from SMEM (no recompile on dt change)

        @pl.loop(0, n_chunks)
        def _(c):
            r = pl.multiple_of(c * chunk_rows, chunk_rows)
            sl = pl.ds(r, chunk_rows)

            # controls: dense (chunk_rows, 128) slabs, loaded once per chunk
            u1 = u_ref[0, sl, :]
            u2 = u_ref[1, sl, :]

            def euler_step(_, carry):
                x1, x2, x3, x4 = carry                 # each (chunk_rows, 128) in vregs
                cosx2 = jnp.cos(x2)
                sinx2 = jnp.sin(x2)

                # analytic inverse of the symmetric 2x2 inertia matrix (VPU, not MXU)
                m12 = -(A3 + A2 * cosx2)
                m22 = A1 + 2.0 * A2 * cosx2
                det = A3 * (A1 - A3) - (A2 * A2) * cosx2 * cosx2
                # approx reciprocal on the EUP + one Newton-Raphson refinement (VPU)
                r0 = pl.reciprocal(det, approx=True)
                inv_det = r0 * (2.0 - det * r0)

                # Coriolis / centripetal term C(x3, x4)
                c1 = -x4 * (2.0 * x3 + x4)
                c2 = x3 * x3

                # damping B @ qdot with baked constants (pure FMAs)
                bx1 = B00 * x3 + B01 * x4
                bx2 = B01 * x3 + B11 * x4

                s = A2 * sinx2
                aux1 = u1 - s * c1 - bx1
                aux2 = u2 - s * c2 - bx2

                mv1 = (A3 * aux1 + m12 * aux2) * inv_det
                mv2 = (m12 * aux1 + m22 * aux2) * inv_det

                return (x1 + dt * x3, x2 + dt * x4, x3 + dt * mv1, x4 + dt * mv2)

            init = (x_ref[0, sl, :], x_ref[1, sl, :], x_ref[2, sl, :], x_ref[3, sl, :])
            x1, x2, x3, x4 = lax.fori_loop(0, n_steps, euler_step, init, unroll=unroll)

            # dense, unmasked lane-major stores (full 128-lane rows, 8-aligned sublanes)
            o_ref[0, sl, :] = x1
            o_ref[1, sl, :] = x2
            o_ref[2, sl, :] = x3
            o_ref[3, sl, :] = x4

    return kernel


def _round_up(n: int, m: int) -> int:
    return ((n + m - 1) // m) * m


def _pick_block_rows(nrows: int, max_rows: int, chunk: int) -> int:
    """Largest multiple of `chunk` that divides nrows and is <= max_rows."""
    best = chunk
    r = chunk
    while r <= min(max_rows, nrows):
        if nrows % r == 0:
            best = r
        r += chunk
    return best


def two_links_arm_rollout(states, controls, time_step, num_steps=1):
    """Batched fused rollout.

    states:   (4, B) f32 — rows [x1, x2, x3, x4], one arm per column
    controls: (2, B) f32
    returns:  (4, B) f32 state after `num_steps` Euler steps.
    """
    states = jnp.asarray(states, jnp.float32)
    controls = jnp.asarray(controls, jnp.float32)
    assert states.shape[0] == 4 and controls.shape[0] == 2
    assert states.shape[1] == controls.shape[1]

    batch = states.shape[1]
    quantum = CHUNK_ROWS * LANES           # 4096 arms: keeps sublane rows a multiple of 32
    padded = _round_up(max(batch, 1), quantum)
    if padded != batch:
        # zero padding is safe: det >= A3*(A1-A3) - A2^2 ~= 0.0033 > 0 for all x2
        states = jnp.pad(states, ((0, 0), (0, padded - batch)))
        controls = jnp.pad(controls, ((0, 0), (0, padded - batch)))

    nrows = padded // LANES
    block_rows = _pick_block_rows(nrows, MAX_BLOCK_ROWS, CHUNK_ROWS)
    grid = (nrows // block_rows,)

    # Repack the batch onto (sublane, lane): each state component is a dense
    # (nrows, 128) slab, so VPU ops use full vreg width and stores are unmasked.
    x3d = states.reshape(4, nrows, LANES)
    u3d = controls.reshape(2, nrows, LANES)
    dt_arr = jnp.asarray([time_step], jnp.float32)

    kernel = make_arm_kernel(num_steps, block_rows, CHUNK_ROWS)
    out = pl.pallas_call(
        kernel,
        out_shape=jax.ShapeDtypeStruct((4, nrows, LANES), jnp.float32),
        grid=grid,
        in_specs=[
            pl.BlockSpec(memory_space=pltpu.MemorySpace.SMEM),          # dt scalar
            pl.BlockSpec((4, block_rows, LANES), lambda i: (0, i, 0)),  # state block
            pl.BlockSpec((2, block_rows, LANES), lambda i: (0, i, 0)),  # control block
        ],
        out_specs=pl.BlockSpec((4, block_rows, LANES), lambda i: (0, i, 0)),
        compiler_params=pltpu.CompilerParams(
            dimension_semantics=("parallel",)),   # shards blocks across v7x's 2 TCs
    )(dt_arr, x3d, u3d)

    return out.reshape(4, padded)[:, :batch]


def reference_forward(state, control, time_step):
    """Pure-JAX transcription of the PyTorch forward, for verification / tiny inputs."""
    x = jnp.asarray(state, jnp.float32)
    u = jnp.asarray(control, jnp.float32)
    dt = jnp.float32(time_step)
    cosx2 = jnp.cos(x[1])
    sinx2 = jnp.sin(x[1])
    m11 = jnp.float32(A3)
    m12 = -(A3 + A2 * cosx2)
    m22 = A1 + 2.0 * A2 * cosx2
    Minv = jnp.stack([jnp.stack([m11, m12]), jnp.stack([m12, m22])])
    Minv = Minv / (A3 * (A1 - A3) - A2 ** 2 * cosx2 ** 2)
    C = jnp.stack([-x[3] * (2.0 * x[2] + x[3]), x[2] ** 2])
    x1x2 = x[0:2] + dt * x[2:4]
    aux = u - A2 * sinx2 * C - B_MAT @ x[2:4]
    x3x4 = x[2:4] + dt * (Minv @ aux)
    return jnp.concatenate([x1x2, x3x4])


def two_links_arm_forward(state, control, time_step, use_pallas=False):
    """Single-instance forward matching TwoLinksArmLayer.forward: (4,), (2,) -> (4,).

    Default is the pure-JAX path: padding one arm to a full tile and launching a
    pallas_call is pure overhead for ~40 bytes of work. Set use_pallas=True to
    route through the Pallas kernel.
    """
    if not use_pallas:
        return reference_forward(state, control, time_step)
    x = jnp.asarray(state, jnp.float32).reshape(4, 1)
    u = jnp.asarray(control, jnp.float32).reshape(2, 1)
    out = two_links_arm_rollout(x, u, time_step, num_steps=1)
    return out[:, 0]


if __name__ == "__main__":
    time_step = 0.01
    dim_control = 2

    key = jax.random.PRNGKey(0)
    k_ctrl, k_state, k_bstate, k_bctrl = jax.random.split(key, 4)

    # --- single-instance path: exact semantics of TwoLinksArmLayer.forward ---
    control = jax.random.uniform(k_ctrl, (dim_control,), dtype=jnp.float32)
    state = jax.random.normal(k_state, (4,), dtype=jnp.float32)

    ref = reference_forward(state, control, time_step)
    next_state = jax.block_until_ready(
        two_links_arm_forward(state, control, time_step, use_pallas=True))
    assert next_state.shape == (4,)
    assert jnp.allclose(next_state, ref, atol=1e-5, rtol=1e-5), (next_state, ref)

    # --- batched single-step: Pallas vs vmapped reference --------------------
    batch = 200            # deliberately not a multiple of 128 -> exercises padding
    states = jax.random.normal(k_bstate, (4, batch), dtype=jnp.float32)
    controls = jax.random.uniform(k_bctrl, (dim_control, batch), dtype=jnp.float32)

    step_fn = jax.vmap(lambda s, c: reference_forward(s, c, time_step),
                       in_axes=(1, 1), out_axes=1)

    out1 = jax.block_until_ready(
        two_links_arm_rollout(states, controls, time_step, num_steps=1))
    ref1 = step_fn(states, controls)
    assert out1.shape == (4, batch)
    assert jnp.allclose(out1, ref1, atol=1e-5, rtol=1e-5), (
        float(jnp.max(jnp.abs(out1 - ref1))))

    # --- batched + fused multi-step rollout -----------------------------------
    num_steps = 5
    out = jax.block_until_ready(
        two_links_arm_rollout(states, controls, time_step, num_steps=num_steps))

    ref_states = states
    for _ in range(num_steps):
        ref_states = step_fn(ref_states, controls)

    assert out.shape == (4, batch)
    assert jnp.allclose(out, ref_states, atol=1e-4, rtol=1e-4), (
        float(jnp.max(jnp.abs(out - ref_states))))

    print("KERNEL_OK")
</pallas_src>

<mosaic_0001>
module attributes {stable_mosaic.version = 11 : i64} {
  func.func @kernel(%arg0: i32, %arg1: memref<1xf32, #tpu.memory_space<smem>>, %arg2: memref<4x32x128xf32, #tpu.memory_space<vmem>>, %arg3: memref<2x32x128xf32, #tpu.memory_space<vmem>>, %arg4: memref<4x32x128xf32, #tpu.memory_space<vmem>>) attributes {dimension_semantics = [#tpu.dimension_semantics<parallel>], iteration_bounds = array<i64: 1>, scalar_prefetch = 0 : i64, scratch_operands = 0 : i64, tpu.core_type = #tpu.core_type<tc>, window_params = [{transform_indices = @transform_0, window_bounds = array<i64: 1>}, {transform_indices = @transform_1, window_bounds = array<i64: 4, 32, 128>}, {transform_indices = @transform_2, window_bounds = array<i64: 2, 32, 128>}, {transform_indices = @transform_3, window_bounds = array<i64: 4, 32, 128>}]} {
    %c0 = arith.constant 0 : index
    %0 = memref.load %arg1[%c0] : memref<1xf32, #tpu.memory_space<smem>>
    %c0_i32 = arith.constant 0 : i32
    %c1_i32 = arith.constant 1 : i32
    %1 = arith.muli %c0_i32, %c1_i32 : i32
    %c0_i32_0 = arith.constant 0 : i32
    %2 = arith.addi %c0_i32_0, %1 : i32
    %c32_i32 = arith.constant 32 : i32
    %3 = arith.muli %2, %c32_i32 : i32
    %4 = tpu.assume_multiple %3, 32 : i32
    %c0_1 = arith.constant 0 : index
    %5 = arith.index_cast %4 : i32 to index
    %c0_2 = arith.constant 0 : index
    %6 = vector.load %arg3[%c0_1, %5, %c0_2] : memref<2x32x128xf32, #tpu.memory_space<vmem>>, vector<1x32x128xf32>
    %7 = vector.shape_cast %6 : vector<1x32x128xf32> to vector<32x128xf32>
    %c1 = arith.constant 1 : index
    %8 = arith.index_cast %4 : i32 to index
    %c0_3 = arith.constant 0 : index
    %9 = vector.load %arg3[%c1, %8, %c0_3] : memref<2x32x128xf32, #tpu.memory_space<vmem>>, vector<1x32x128xf32>
    %10 = vector.shape_cast %9 : vector<1x32x128xf32> to vector<32x128xf32>
    %c0_4 = arith.constant 0 : index
    %11 = arith.index_cast %4 : i32 to index
    %c0_5 = arith.constant 0 : index
    %12 = vector.load %arg2[%c0_4, %11, %c0_5] : memref<4x32x128xf32, #tpu.memory_space<vmem>>, vector<1x32x128xf32>
    %13 = vector.shape_cast %12 : vector<1x32x128xf32> to vector<32x128xf32>
    %c1_6 = arith.constant 1 : index
    %14 = arith.index_cast %4 : i32 to index
    %c0_7 = arith.constant 0 : index
    %15 = vector.load %arg2[%c1_6, %14, %c0_7] : memref<4x32x128xf32, #tpu.memory_space<vmem>>, vector<1x32x128xf32>
    %16 = vector.shape_cast %15 : vector<1x32x128xf32> to vector<32x128xf32>
    %c2 = arith.constant 2 : index
    %17 = arith.index_cast %4 : i32 to index
    %c0_8 = arith.constant 0 : index
    %18 = vector.load %arg2[%c2, %17, %c0_8] : memref<4x32x128xf32, #tpu.memory_space<vmem>>, vector<1x32x128xf32>
    %19 = vector.shape_cast %18 : vector<1x32x128xf32> to vector<32x128xf32>
    %c3 = arith.constant 3 : index
    %20 = arith.index_cast %4 : i32 to index
    %c0_9 = arith.constant 0 : index
    %21 = vector.load %arg2[%c3, %20, %c0_9] : memref<4x32x128xf32, #tpu.memory_space<vmem>>, vector<1x32x128xf32>
    %22 = vector.shape_cast %21 : vector<1x32x128xf32> to vector<32x128xf32>
    %c0_i32_10 = arith.constant 0 : i32
    %23 = math.cos %16 : vector<32x128xf32>
    %24 = math.sin %16 : vector<32x128xf32>
    %cst = arith.constant 4.800000e-02 : f32
    %25 = vector.broadcast %cst : f32 to vector<32x128xf32>
    %26 = arith.mulf %25, %23 : vector<32x128xf32>
    %cst_11 = arith.constant 4.500000e-02 : f32
    %27 = vector.broadcast %cst_11 : f32 to vector<32x128xf32>
    %28 = arith.addf %27, %26 : vector<32x128xf32>
    %cst_12 = arith.constant 0.000000e+00 : f32
    %29 = vector.broadcast %cst_12 : f32 to vector<32x128xf32>
    %30 = arith.subf %29, %28 : vector<32x128xf32>
    %cst_13 = arith.constant 9.600000e-02 : f32
    %31 = vector.broadcast %cst_13 : f32 to vector<32x128xf32>
    %32 = arith.mulf %31, %23 : vector<32x128xf32>
    %cst_14 = arith.constant 1.700000e-01 : f32
    %33 = vector.broadcast %cst_14 : f32 to vector<32x128xf32>
    %34 = arith.addf %33, %32 : vector<32x128xf32>
    %cst_15 = arith.constant 2.304000e-03 : f32
    %35 = vector.broadcast %cst_15 : f32 to vector<32x128xf32>
    %36 = arith.mulf %35, %23 : vector<32x128xf32>
    %37 = arith.mulf %36, %23 : vector<32x128xf32>
    %cst_16 = arith.constant 5.625000e-03 : f32
    %38 = vector.broadcast %cst_16 : f32 to vector<32x128xf32>
    %39 = arith.subf %38, %37 : vector<32x128xf32>
    %40 = tpu.reciprocal %39 {approx = true} : vector<32x128xf32> -> vector<32x128xf32>
    %41 = arith.mulf %39, %40 : vector<32x128xf32>
    %cst_17 = arith.constant 2.000000e+00 : f32
    %42 = vector.broadcast %cst_17 : f32 to vector<32x128xf32>
    %43 = arith.subf %42, %41 : vector<32x128xf32>
    %44 = arith.mulf %40, %43 : vector<32x128xf32>
    %cst_18 = arith.constant 0.000000e+00 : f32
    %45 = vector.broadcast %cst_18 : f32 to vector<32x128xf32>
    %46 = arith.subf %45, %22 : vector<32x128xf32>
    %cst_19 = arith.constant 2.000000e+00 : f32
    %47 = vector.broadcast %cst_19 : f32 to vector<32x128xf32>
    %48 = arith.mulf %47, %19 : vector<32x128xf32>
    %49 = arith.addf %48, %22 : vector<32x128xf32>
    %50 = arith.mulf %46, %49 : vector<32x128xf32>
    %51 = arith.mulf %19, %19 : vector<32x128xf32>
    %cst_20 = arith.constant 5.000000e-02 : f32
    %52 = vector.broadcast %cst_20 : f32 to vector<32x128xf32>
    %53 = arith.mulf %52, %19 : vector<32x128xf32>
    %cst_21 = arith.constant 2.500000e-02 : f32
    %54 = vector.broadcast %cst_21 : f32 to vector<32x128xf32>
    %55 = arith.mulf %54, %22 : vector<32x128xf32>
    %56 = arith.addf %53, %55 : vector<32x128xf32>
    %cst_22 = arith.constant 2.500000e-02 : f32
    %57 = vector.broadcast %cst_22 : f32 to vector<32x128xf32>
    %58 = arith.mulf %57, %19 : vector<32x128xf32>
    %cst_23 = arith.constant 5.000000e-02 : f32
    %59 = vector.broadcast %cst_23 : f32 to vector<32x128xf32>
    %60 = arith.mulf %59, %22 : vector<32x128xf32>
    %61 = arith.addf %58, %60 : vector<32x128xf32>
    %cst_24 = arith.constant 4.800000e-02 : f32
    %62 = vector.broadcast %cst_24 : f32 to vector<32x128xf32>
    %63 = arith.mulf %62, %24 : vector<32x128xf32>
    %64 = arith.mulf %63, %50 : vector<32x128xf32>
    %65 = arith.subf %7, %64 : vector<32x128xf32>
    %66 = arith.subf %65, %56 : vector<32x128xf32>
    %67 = arith.mulf %63, %51 : vector<32x128xf32>
    %68 = arith.subf %10, %67 : vector<32x128xf32>
    %69 = arith.subf %68, %61 : vector<32x128xf32>
    %cst_25 = arith.constant 4.500000e-02 : f32
    %70 = vector.broadcast %cst_25 : f32 to vector<32x128xf32>
    %71 = arith.mulf %70, %66 : vector<32x128xf32>
    %72 = arith.mulf %30, %69 : vector<32x128xf32>
    %73 = arith.addf %71, %72 : vector<32x128xf32>
    %74 = arith.mulf %73, %44 : vector<32x128xf32>
    %75 = arith.mulf %30, %66 : vector<32x128xf32>
    %76 = arith.mulf %34, %69 : vector<32x128xf32>
    %77 = arith.addf %75, %76 : vector<32x128xf32>
    %78 = arith.mulf %77, %44 : vector<32x128xf32>
    %79 = vector.broadcast %0 : f32 to vector<32x128xf32>
    %80 = arith.mulf %79, %19 : vector<32x128xf32>
    %81 = arith.addf %13, %80 : vector<32x128xf32>
    %82 = vector.broadcast %0 : f32 to vector<32x128xf32>
    %83 = arith.mulf %82, %22 : vector<32x128xf32>
    %84 = arith.addf %16, %83 : vector<32x128xf32>
    %85 = vector.broadcast %0 : f32 to vector<32x128xf32>
    %86 = arith.mulf %85, %74 : vector<32x128xf32>
    %87 = arith.addf %19, %86 : vector<32x128xf32>
    %88 = vector.broadcast %0 : f32 to vector<32x128xf32>
    %89 = arith.mulf %88, %78 : vector<32x128xf32>
    %90 = arith.addf %22, %89 : vector<32x128xf32>
    %c0_26 = arith.constant 0 : index
    %91 = arith.index_cast %4 : i32 to index
    %c0_27 = arith.constant 0 : index
    %92 = vector.load %arg4[%c0_26, %91, %c0_27] : memref<4x32x128xf32, #tpu.memory_space<vmem>>, vector<1x32x128xf32>
    %93 = vector.shape_cast %92 : vector<1x32x128xf32> to vector<32x128xf32>
    %94 = vector.shape_cast %81 : vector<32x128xf32> to vector<1x32x128xf32>
    tpu.vector_store %arg4[%c0_26, %91, %c0_27], %94 {strides = array<i32>} : memref<4x32x128xf32, #tpu.memory_space<vmem>>, vector<1x32x128xf32>,
    %c1_28 = arith.constant 1 : index
    %95 = arith.index_cast %4 : i32 to index
    %c0_29 = arith.constant 0 : index
    %96 = vector.load %arg4[%c1_28, %95, %c0_29] : memref<4x32x128xf32, #tpu.memory_space<vmem>>, vector<1x32x128xf32>
    %97 = vector.shape_cast %96 : vector<1x32x128xf32> to vector<32x128xf32>
    %98 = vector.shape_cast %84 : vector<32x128xf32> to vector<1x32x128xf32>
    tpu.vector_store %arg4[%c1_28, %95, %c0_29], %98 {strides = array<i32>} : memref<4x32x128xf32, #tpu.memory_space<vmem>>, vector<1x32x128xf32>,
    %c2_30 = arith.constant 2 : index
    %99 = arith.index_cast %4 : i32 to index
    %c0_31 = arith.constant 0 : index
    %100 = vector.load %arg4[%c2_30, %99, %c0_31] : memref<4x32x128xf32, #tpu.memory_space<vmem>>, vector<1x32x128xf32>
    %101 = vector.shape_cast %100 : vector<1x32x128xf32> to vector<32x128xf32>
    %102 = vector.shape_cast %87 : vector<32x128xf32> to vector<1x32x128xf32>
    tpu.vector_store %arg4[%c2_30, %99, %c0_31], %102 {strides = array<i32>} : memref<4x32x128xf32, #tpu.memory_space<vmem>>, vector<1x32x128xf32>,
    %c3_32 = arith.constant 3 : index
    %103 = arith.index_cast %4 : i32 to index
    %c0_33 = arith.constant 0 : index
    %104 = vector.load %arg4[%c3_32, %103, %c0_33] : memref<4x32x128xf32, #tpu.memory_space<vmem>>, vector<1x32x128xf32>
    %105 = vector.shape_cast %104 : vector<1x32x128xf32> to vector<32x128xf32>
    %106 = vector.shape_cast %90 : vector<32x128xf32> to vector<1x32x128xf32>
    tpu.vector_store %arg4[%c3_32, %103, %c0_33], %106 {strides = array<i32>} : memref<4x32x128xf32, #tpu.memory_space<vmem>>, vector<1x32x128xf32>,
    %c1_i32_34 = arith.constant 1 : i32
    return
  }
  func.func @transform_0(%arg0: i32) -> i32 {
    %c0_i32 = arith.constant 0 : i32
    %c0_i32_0 = arith.constant 0 : i32
    return %c0_i32 : i32
  }
  func.func @transform_1(%arg0: i32) -> (i32, i32, i32) {
    %c0_i32 = arith.constant 0 : i32
    %c0_i32_0 = arith.constant 0 : i32
    %c0_i32_1 = arith.constant 0 : i32
    return %c0_i32, %arg0, %c0_i32_0 : i32, i32, i32
  }
  func.func @transform_2(%arg0: i32) -> (i32, i32, i32) {
    %c0_i32 = arith.constant 0 : i32
    %c0_i32_0 = arith.constant 0 : i32
    %c0_i32_1 = arith.constant 0 : i32
    return %c0_i32, %arg0, %c0_i32_0 : i32, i32, i32
  }
  func.func @transform_3(%arg0: i32) -> (i32, i32, i32) {
    %c0_i32 = arith.constant 0 : i32
    %c0_i32_0 = arith.constant 0 : i32
    %c0_i32_1 = arith.constant 0 : i32
    return %c0_i32, %arg0, %c0_i32_0 : i32, i32, i32
  }
}

</mosaic_0001>

<bundles_post_ra>
// kernel: tpu_custom_call.1
= control target key start
LH: loop header
LB: loop body
LE: loop exit
PB: predicated region body
PF: predicated region fallthrough
CT: control target
= control target key end

     0   :  { %9 = vsyncpa [#allocation4], 0  ;;  %s2453_s0 = inlined_call_operand.<no memory space> [shape: f32[1], index: 0, kind: input, shape index: {}]   ;;  %s2454_s1 = inlined_call_operand.hbm [shape: f32[4,32,128], index: 1, kind: input, shape index: {}]   ;;  %s2455_s2 = inlined_call_operand.hbm [shape: f32[2,32,128], index: 2, kind: input, shape index: {}]   ;;  %s2456_s3 = inlined_call_operand.hbm [shape: f32[4,32,128], index: 3, kind: output, shape index: {}]  }
   0x1   :  { %10 = vsyncpa [#allocation7], 0 }
   0x2   :  { %11 = vsyncpa [#allocation5], 0  ;;  %s18_s14 = sshll.u32 %s2454_s1, 4  ;;  %s1678_s15 = smov [#allocation3]   ;;  %s19_s14 = int_to_ptr.hbm [resolvable:$true] %s18_s14 }
   0x3   :  { %s20_s16 = sshll.u32 %s1678_s15, 4  ;;  %s31_s19 = sshll.u32 %s2455_s2, 4  ;;  %s21_s16 = int_to_ptr.vmem [resolvable:$true] %s20_s16  ;;  %s32_s19 = int_to_ptr.hbm [resolvable:$true] %s31_s19 }
   0x4   :  { %s1679_s20 = smov 128   ;;  %s1680_s21 = smov 8  }
   0x5   :  { %26 = dma.hbm_to_vmem [thread:$0]  %s19_s14, 2048, %s21_s16, [#allocation4], %s1679_s20, %s1679_s20, %s1680_s21  }
   0x6   :  { %s1681_s22 = smov [#allocation6]  }
   0x7   :  { %s33_s23 = sshll.u32 %s1681_s22, 4  ;;  %s34_s23 = int_to_ptr.vmem [resolvable:$true] %s33_s23 }
   0x8   :  { %39 = dma.hbm_to_vmem [thread:$0]  %s32_s19, 1024, %s34_s23, [#allocation7], %s1679_s20, %s1679_s20, %s1680_s21  }
   0x9   :  { %1672 = dma.done.wait [#allocation4], 2048  }
   0xa   :  { %1673 = vsyncadd [#allocation4], 4294965248 }
   0xb   :  { %1674 = dma.done.wait [#allocation7], 1024  }
   0xc   :  { %1675 = vsyncadd [#allocation7], 4294966272  ;;  %v1725_v0 = vstv %s2453_s0  ;;  %v59_v1 = vld [vmem:[#allocation3] sm:$0xff]  ;;  %v60_v3 = vld [vmem:[#allocation3 + $0x8] sm:$0xff]  ;;  %v1682_v45 = vmov 683565275  }
   0xd   :  { %v70_v2 = vld [vmem:[#allocation3 + $0x40] sm:$0xff]  ;;  %v71_v5 = vld [vmem:[#allocation3 + $0x48] sm:$0xff]  ;;  %v61_v6 = vld [vmem:[#allocation3 + $0x10] sm:$0xff]  ;;  %v1683_v47 = vmov 2475754826   ;;  %s1689_s0 = smov [#allocation8]  }
   0xe   :  { %v1469_v4 = vmul.f32 %v1725_v0, %v70_v2  ;;  %v72_v7 = vld [vmem:[#allocation3 + $0x50] sm:$0xff]  ;;  %v1470_v8 = vmul.f32 %v1725_v0, %v71_v5  ;;  %v62_v10 = vld [vmem:[#allocation3 + $0x18] sm:$0xff]  ;;  %v1730_v12 = vld [vmem:[#allocation3 + $0x20] sm:$0xff]  ;;  %v1684_v49 = vmov 2131351028   ;;  %s1524_s24 = sshll.u32 %s1689_s0, 4  ;;  %s1525_s24 = int_to_ptr.vmem [resolvable:$true] %s1524_s24 }
   0xf   :  { %v1471_v9 = vmul.f32 %v1725_v0, %v72_v7  ;;  %v73_v11 = vld [vmem:[#allocation3 + $0x58] sm:$0xff]  ;;  %v80_v15 = vand.u32 2147483647, %v1730_v12  ;;  %v1734_v16 = vld [vmem:[#allocation3 + $0x28] sm:$0xff]  ;;  %v83_v19 = vand.u32 2139095040, %v1730_v12  ;;  %v1738_v21 = vld [vmem:[#allocation3 + $0x30] sm:$0xff] }
  0x10   :  { %v1473_v13 = vadd.f32 %v1469_v4, %v59_v1  ;;  %v1472_v14 = vmul.f32 %v1725_v0, %v73_v11  ;;  %v1474_v17 = vadd.f32 %v1470_v8, %v60_v3  ;;  %v234_v20 = vand.u32 2147483647, %v1734_v16  ;;  %s1526_s27 = sshll.u32 %s2456_s3, 4  ;;  %s1527_s27 = int_to_ptr.hbm [resolvable:$true] %s1526_s27 }
  0x11   :  { %v1475_v18 = vadd.f32 %v1471_v9, %v61_v6  ;;  %v87_v23 = vand.u32 8388607, %v80_v15  ;;  %v237_v24 = vand.u32 2139095040, %v1734_v16  ;;  %v84_v25 = vshrl.u32 %v83_v19, 23 }
  0x12   :  { %1501 = vst [vmem:[#allocation8] sm:$0xff] %v1473_v13  ;;  %v1476_v22 = vadd.f32 %v1472_v14, %v62_v10  ;;  %v241_v26 = vand.u32 8388607, %v234_v20  ;;  %v391_v28 = vand.u32 2139095040, %v1738_v21  ;;  %v1685_v51 = vmov 2102212464  }
  0x13   :  { %1502 = vst [vmem:[#allocation8 + $0x8] sm:$0xff] %v1474_v17  ;;  %v238_v27 = vshrl.u32 %v237_v24, 23  ;;  %v1547_v29 = vadd.s32 4294967169, %v84_v25  ;;  %v88_v30 = vor.u32 8388608, %v87_v23  ;;  %v1686_v53 = vmov 920167782  }
  0x14   :  { %1503 = vst [vmem:[#allocation8 + $0x10] sm:$0xff] %v1475_v18  ;;  %v242_v33 = vor.u32 8388608, %v241_v26  ;;  %v392_v35 = vshrl.u32 %v391_v28, 23  ;;  %v1687_v62 = vmov 1326507024  }
  0x15   :  { %1504 = vst [vmem:[#allocation8 + $0x18] sm:$0xff] %v1476_v22  ;;  %v1550_v31 = vadd.s32 4294967169, %v238_v27  ;;  %v90_v32 = vadd.s32 1, %v1547_v29  ;;  %v1746_v37 = vshll.u32 %v88_v30, 8 }
  0x16   :  { %v1748_v40 = vshll.u32 %v242_v33, 8  ;;  %v1754_v43 = vadd.s32 4294967169, %v392_v35 }
  0x17   :  { %v244_v34 = vadd.s32 1, %v1550_v31  ;;  %vm91_vm0 = vcmp.gt.s32.totalorder %v90_v32, 0  ;;  %v129_v55 = vand.u32 65535, %v1746_v37  ;;  %v130_v56 = vshrl.u32 %v1746_v37, 16 }
  0x18   :  { %v92_v36 = vsel %vm91_vm0, %v90_v32, 0  ;;  %v1767_v60 = vand.u32 65535, %v1748_v40 }
  0x19   :  { %vm245_vm1 = vcmp.gt.s32.totalorder %v244_v34, 0  ;;  %v94_v38 = vand.u32 31, %v92_v36  ;;  %v1750_v41 = vshrl.u32 %v92_v36, 5 }
  0x1a   :  { %v246_v39 = vsel %vm245_vm1, %v244_v34, 0 }
  0x1b   :  { %v1752_v42 = vand.u32 31, %v246_v39  ;;  %v95_v44 = vsub.s32 32, %v94_v38  ;;  %v97_v46 = vshll.u32 %v1682_v45, %v94_v38  ;;  %v100_v48 = vshll.u32 %v1683_v47, %v94_v38 }
  0x1c   :  { %v103_v50 = vshll.u32 %v1684_v49, %v94_v38  ;;  %v106_v52 = vshll.u32 %v1685_v51, %v94_v38  ;;  %v109_v54 = vshll.u32 %v1686_v53, %v94_v38  ;;  %vm112_vm2 = vcmp.lt.s32.totalorder %v1750_v41, 1 }
  0x1d   :  { %v98_v57 = vshrl.u32 %v1683_v47, %v95_v44  ;;  %v101_v58 = vshrl.u32 %v1684_v49, %v95_v44  ;;  %v104_v59 = vshrl.u32 %v1685_v51, %v95_v44  ;;  %v107_v61 = vshrl.u32 %v1686_v53, %v95_v44 }
  0x1e   :  { %v110_v63 = vshrl.u32 %v1687_v62, %v95_v44  ;;  %vm115_vm3 = vcmp.lt.s32.totalorder %v1750_v41, 4  ;;  %v1774_v4 = vsub.s32 32, %v1752_v42  ;;  %v96_v5 = vshrl.u32 %v1682_v45, %v95_v44 }
  0x1f   :  { %v99_v1 = vor.u32 %v98_v57, %v97_v46  ;;  %v102_v2 = vor.u32 %v101_v58, %v100_v48  ;;  %v105_v3 = vor.u32 %v104_v59, %v103_v50  ;;  %v108_v6 = vor.u32 %v107_v61, %v106_v52 }
  0x20   :  { %v111_v7 = vor.u32 %v110_v63, %v109_v54  ;;  %vm114_vm4 = vcmp.lt.s32.totalorder %v1750_v41, 3  ;;  %vm113_vm5 = vcmp.lt.s32.totalorder %v1750_v41, 2  ;;  %v1783_v10 = vshrl.u32 %v246_v39, 5 }
  0x21   :  { %v120_v8 = vsel %vm112_vm2, %v99_v1, %v102_v2  ;;  %v124_v9 = vsel %vm112_vm2, %v102_v2, %v105_v3  ;;  %v121_v11 = vsel %vm115_vm3, %v108_v6, 920167782  ;;  %v251_v14 = vshll.u32 %v1682_v45, %v1752_v42 }
  0x22   :  { %v125_v13 = vsel %vm115_vm3, %v111_v7, 1326507024  ;;  %v254_v17 = vshll.u32 %v1683_v47, %v1752_v42  ;;  %v117_v18 = vsel %vm115_vm3, %v105_v3, 2102212464  ;;  %v122_v19 = vsel %vm114_vm4, %v105_v3, %v121_v11 }
  0x23   :  { %v126_v22 = vsel %vm114_vm4, %v108_v6, %v125_v13  ;;  %v252_v23 = vshrl.u32 %v1683_v47, %v1774_v4  ;;  %v116_v24 = vsel %vm112_vm2, %v96_v5, %v99_v1  ;;  %v123_v25 = vsel %vm113_vm5, %v120_v8, %v122_v19 }
  0x24   :  { %v127_v26 = vsel %vm113_vm5, %v124_v9, %v126_v22  ;;  %v255_v27 = vshrl.u32 %v1684_v49, %v1774_v4  ;;  %v153_v30 = vand.u32 65535, %v123_v25  ;;  %v154_v31 = vshrl.u32 %v123_v25, 16 }
  0x25   :  { %v131_v28 = vand.u32 65535, %v127_v26  ;;  %v132_v29 = vshrl.u32 %v127_v26, 16  ;;  %v118_v32 = vsel %vm114_vm4, %v102_v2, %v117_v18  ;;  %v1811_v33 = vor.u32 %v252_v23, %v251_v14 }
  0x26   :  { %v1813_v34 = vor.u32 %v255_v27, %v254_v17  ;;  %v257_v35 = vshll.u32 %v1684_v49, %v1752_v42  ;;  %v258_v44 = vshrl.u32 %v1685_v51, %v1774_v4  ;;  %v155_v48 = vmul.u32 %v153_v30, %v129_v55 }
  0x27   :  { %v133_v36 = vmul.u32 %v131_v28, %v129_v55  ;;  %v134_v38 = vmul.u32 %v132_v29, %v129_v55  ;;  %v135_v39 = vmul.u32 %v131_v28, %v130_v56  ;;  %v136_v46 = vmul.u32 %v132_v29, %v130_v56 }
  0x28   :  { %v156_v50 = vmul.u32 %v154_v31, %v129_v55  ;;  %v157_v52 = vmul.u32 %v153_v30, %v130_v56  ;;  %v158_v59 = vmul.u32 %v154_v31, %v130_v56  ;;  %v260_v6 = vshll.u32 %v1685_v51, %v1752_v42 }
  0x29   :  { %v137_v54 = vshll.u32 %v134_v38, 16  ;;  %v138_v57 = vshrl.u32 %v134_v38, 16  ;;  %v139_v58 = vshll.u32 %v135_v39, 16  ;;  %v140_v61 = vshrl.u32 %v135_v39, 16 }
  0x2a   :  { %v159_v63 = vshll.u32 %v156_v50, 16  ;;  %v160_v1 = vshrl.u32 %v156_v50, 16  ;;  %v161_v2 = vshll.u32 %v157_v52, 16  ;;  %v162_v5 = vshrl.u32 %v157_v52, 16 }
  0x2b   :  { %vm141_vm6 = vc.u32 %v133_v36, %v137_v54  ;;  %v143_v3 = vadd.s32 %v137_v54, %v133_v36  ;;  %v1688_v7 = vmov 0   ;;  %v261_v9 = vshrl.u32 %v1686_v53, %v1774_v4 }
  0x2c   :  { %v142_v8 = vsel %vm141_vm6, 1, %v1688_v7  ;;  %vm163_vm7 = vc.u32 %v155_v48, %v159_v63  ;;  %v165_v55 = vadd.s32 %v159_v63, %v155_v48  ;;  %v263_v13 = vshll.u32 %v1686_v53, %v1752_v42 }
  0x2d   :  { %v144_v11 = vadd.s32 %v142_v8, %v136_v46  ;;  %vm145_vm8 = vc.u32 %v143_v3, %v139_v58  ;;  %v164_v56 = vsel %vm163_vm7, 1, %v1688_v7  ;;  %v259_v18 = vor.u32 %v258_v44, %v257_v35 }
  0x2e   :  { %v146_v14 = vsel %vm145_vm8, 1, %v1688_v7  ;;  %v166_v17 = vadd.s32 %v164_v56, %v158_v59  ;;  %vm167_vm9 = vc.u32 %v165_v55, %v161_v2  ;;  %v262_v23 = vor.u32 %v261_v9, %v260_v6 }
  0x2f   :  { %v148_v19 = vadd.s32 %v146_v14, %v144_v11  ;;  %v168_v22 = vsel %vm167_vm9, 1, %v1688_v7  ;;  %v264_v25 = vshrl.u32 %v1687_v62, %v1774_v4  ;;  %v1831_v26 = vadd.s32 %v165_v55, %v161_v2 }
  0x30   :  { %v170_v27 = vadd.s32 %v168_v22, %v166_v17  ;;  %vm266_vm10 = vcmp.lt.s32.totalorder %v1783_v10, 1  ;;  %vm268_vm11 = vcmp.lt.s32.totalorder %v1783_v10, 3  ;;  %vm267_vm12 = vcmp.lt.s32.totalorder %v1783_v10, 2 }
  0x31   :  { %v149_v42 = vadd.s32 %v148_v19, %v138_v57  ;;  %v265_v28 = vor.u32 %v264_v25, %v263_v13  ;;  %vm269_vm13 = vcmp.lt.s32.totalorder %v1783_v10, 4  ;;  %v119_v29 = vsel %vm113_vm5, %v116_v24, %v118_v32 }
  0x32   :  { %v171_v30 = vadd.s32 %v170_v27, %v160_v1  ;;  %v274_v31 = vsel %vm266_vm10, %v1811_v33, %v1813_v34  ;;  %v275_v35 = vsel %vm269_vm13, %v262_v23, 920167782  ;;  %v278_v39 = vsel %vm266_vm10, %v1813_v34, %v259_v18 }
  0x33   :  { %v1845_v36 = vadd.s32 %v149_v42, %v140_v61  ;;  %v276_v38 = vsel %vm268_vm11, %v259_v18, %v275_v35  ;;  %v398_v41 = vadd.s32 1, %v1754_v43  ;;  %v279_v44 = vsel %vm269_vm13, %v265_v28, 1326507024 }
  0x34   :  { %v172_v24 = vadd.s32 %v171_v30, %v162_v5  ;;  %v277_v32 = vsel %vm267_vm12, %v274_v31, %v276_v38  ;;  %v284_v46 = vshrl.u32 %v1748_v40, 16  ;;  %v173_v48 = vmul.u32 %v1746_v37, %v119_v29 }
  0x35   :  { %vm175_vm14 = vc.u32 %v1845_v36, %v1831_v26  ;;  %v280_v50 = vsel %vm268_vm11, %v262_v23, %v279_v44  ;;  %v307_v52 = vand.u32 65535, %v277_v32  ;;  %v308_v57 = vshrl.u32 %v277_v32, 16 }
  0x36   :  { %v176_v54 = vadd.s32 1, %v172_v24  ;;  %v281_v43 = vsel %vm267_vm12, %v278_v39, %v280_v50  ;;  %v250_v58 = vshrl.u32 %v1682_v45, %v1774_v4  ;;  %vm399_vm15 = vcmp.gt.s32.totalorder %v398_v41, 0 }
  0x37   :  { %v285_v59 = vand.u32 65535, %v281_v43  ;;  %v286_v61 = vshrl.u32 %v281_v43, 16  ;;  %v310_v37 = vmul.u32 %v308_v57, %v1767_v60  ;;  %v311_v1 = vmul.u32 %v307_v52, %v284_v46 }
  0x38   :  { %v177_v63 = vsel %vm175_vm14, %v176_v54, %v172_v24  ;;  %v309_v6 = vmul.u32 %v307_v52, %v1767_v60  ;;  %v400_v9 = vsel %vm399_vm15, %v398_v41, 0  ;;  %v270_v4 = vsel %vm266_vm10, %v250_v58, %v1811_v33 }
  0x39   :  { %v178_v2 = vadd.s32 %v177_v63, %v173_v48  ;;  %v287_v3 = vmul.u32 %v285_v59, %v1767_v60  ;;  %v288_v5 = vmul.u32 %v286_v61, %v1767_v60  ;;  %v289_v8 = vmul.u32 %v285_v59, %v284_v46 }
  0x3a   :  { %v313_v55 = vshll.u32 %v310_v37, 16  ;;  %v290_v56 = vmul.u32 %v286_v61, %v284_v46  ;;  %v271_v14 = vsel %vm269_vm13, %v259_v18, 2102212464  ;;  %v312_v19 = vmul.u32 %v308_v57, %v284_v46 }
  0x3b   :  { %v179_v11 = vadd.s32 536870912, %v178_v2  ;;  %v291_v13 = vshll.u32 %v288_v5, 16  ;;  %v293_v17 = vshll.u32 %v289_v8, 16  ;;  %v315_v22 = vshll.u32 %v311_v1, 16 }
  0x3c   :  { %vm317_vm1 = vc.u32 %v309_v6, %v313_v55  ;;  %v319_v42 = vadd.s32 %v313_v55, %v309_v6  ;;  %v402_v28 = vand.u32 31, %v400_v9  ;;  %v292_v29 = vshrl.u32 %v288_v5, 16 }
  0x3d   :  { %v1876_v23 = vshrl.u32 %v179_v11, 30  ;;  %vm295_vm0 = vc.u32 %v287_v3, %v291_v13  ;;  %v297_v60 = vadd.s32 %v291_v13, %v287_v3  ;;  %v318_v27 = vsel %vm317_vm1, 1, %v1688_v7 }
  0x3e   :  { %v296_v25 = vsel %vm295_vm0, 1, %v1688_v7  ;;  %v314_v31 = vshrl.u32 %v310_v37, 16  ;;  %v320_v35 = vadd.s32 %v318_v27, %v312_v19  ;;  %vm321_vm3 = vc.u32 %v319_v42, %v315_v22 }
  0x3f   :  { %v181_v33 = vshll.u32 %v1876_v23, 30  ;;  %v298_v30 = vadd.s32 %v296_v25, %v290_v56  ;;  %vm299_vm2 = vc.u32 %v297_v60, %v293_v17  ;;  %v294_v39 = vshrl.u32 %v289_v8, 16 }
  0x40   :  { %v300_v18 = vsel %vm299_vm2, 1, %v1688_v7  ;;  %v322_v24 = vsel %vm321_vm3, 1, %v1688_v7  ;;  %v272_v32 = vsel %vm268_vm11, %v1813_v34, %v271_v14  ;;  %v316_v44 = vshrl.u32 %v311_v1, 16 }
  0x41   :  { %v1882_v38 = vsub.s32 %v178_v2, %v181_v33  ;;  %v302_v41 = vadd.s32 %v300_v18, %v298_v30  ;;  %v324_v46 = vadd.s32 %v322_v24, %v320_v35  ;;  %v1888_v48 = vsub.s32 32, %v402_v28 }
  0x42   :  { %v1892_v54 = vadd.s32 %v319_v42, %v315_v22  ;;  %v273_v57 = vsel %vm267_vm12, %v270_v4, %v272_v32  ;;  %v388_v59 = vand.u32 2147483647, %v1738_v21  ;;  %v1899_v34 = vshrl.u32 %v400_v9, 5  ;;  %v1916_v9 = vld [vmem:[#allocation3 + $0x60] sm:$0xff] }
  0x43   :  { %v184_v50 = vsub.s32 0, %v1882_v38  ;;  %v303_v52 = vadd.s32 %v302_v41, %v292_v29  ;;  %vm183_vm4 = vcmp.lt.s32.totalorder %v1882_v38, 0  ;;  %v325_v43 = vadd.s32 %v324_v46, %v314_v31 }
  0x44   :  { %v405_v63 = vshll.u32 %v1682_v45, %v402_v28  ;;  %v406_v37 = vshrl.u32 %v1683_v47, %v1888_v48  ;;  %v408_v1 = vshll.u32 %v1683_v47, %v402_v28  ;;  %v409_v10 = vshrl.u32 %v1684_v49, %v1888_v48 }
  0x45   :  { %v1896_v58 = vadd.s32 %v303_v52, %v294_v39  ;;  %v326_v61 = vadd.s32 %v325_v43, %v316_v44  ;;  %v185_v2 = vsel %vm183_vm4, %v184_v50, %v1882_v38  ;;  %v411_v3 = vshll.u32 %v1684_v49, %v402_v28 }
  0x46   :  { %v414_v5 = vshll.u32 %v1685_v51, %v402_v28  ;;  %v412_v8 = vshrl.u32 %v1685_v51, %v1888_v48  ;;  %v415_v55 = vshrl.u32 %v1686_v53, %v1888_v48  ;;  %v327_v11 = vmul.u32 %v1748_v40, %v273_v57 }
  0x47   :  { %vm329_vm5 = vc.u32 %v1896_v58, %v1892_v54  ;;  %v330_v6 = vadd.s32 1, %v326_v61  ;;  %v1477_v4 = vmul.f32 %v1725_v0, %v1916_v9  ;;  %v395_v56 = vand.u32 8388607, %v388_v59 }
  0x48   :  { %v417_v13 = vshll.u32 %v1686_v53, %v402_v28  ;;  %v418_v14 = vshrl.u32 %v1687_v62, %v1888_v48  ;;  %v186_v17 = vclz %v185_v2  ;;  %v416_v22 = vor.u32 %v415_v55, %v414_v5 }
  0x49   :  { %v331_v19 = vsel %vm329_vm5, %v330_v6, %v326_v61  ;;  %v1926_v60 = vor.u32 %v406_v37, %v405_v63  ;;  %v1928_v25 = vor.u32 %v409_v10, %v408_v1  ;;  %v1930_v27 = vor.u32 %v412_v8, %v411_v3 }
  0x4a   :  { %vm420_vm6 = vcmp.lt.s32.totalorder %v1899_v34, 1  ;;  %v1481_v40 = vadd.f32 %v1477_v4, %v1730_v12  ;;  %v332_v42 = vadd.s32 %v331_v19, %v327_v11  ;;  %vm422_vm7 = vcmp.lt.s32.totalorder %v1899_v34, 3 }
  0x4b   :  { %vm423_vm8 = vcmp.lt.s32.totalorder %v1899_v34, 4  ;;  %v396_v28 = vor.u32 8388608, %v395_v56  ;;  %v419_v33 = vor.u32 %v418_v14, %v417_v13  ;;  %v1548_v29 = vadd.s32 4294967294, %v186_v17 }
  0x4c   :  { %1506 = vst [vmem:[#allocation8 + $0x20] sm:$0xff] %v1481_v40  ;;  %v333_v30 = vadd.s32 536870912, %v332_v42  ;;  %v429_v18 = vsel %vm423_vm8, %v416_v22, 920167782  ;;  %vm421_vm9 = vcmp.lt.s32.totalorder %v1899_v34, 2  ;;  %v428_v31 = vsel %vm420_vm6, %v1926_v60, %v1928_v25 }
  0x4d   :  { %v430_v35 = vsel %vm422_vm7, %v1930_v27, %v429_v18  ;;  %v432_v41 = vsel %vm420_vm6, %v1928_v25, %v1930_v27  ;;  %v433_v24 = vsel %vm423_vm8, %v419_v33, 1326507024  ;;  %v1954_v32 = vshll.u32 %v396_v28, 8 }
  0x4e   :  { %v1946_v39 = vshrl.u32 %v333_v30, 30  ;;  %vm1549_vm10 = vcmp.lt.s32.totalorder %v1548_v29, 0  ;;  %v431_v46 = vsel %vm421_vm9, %v428_v31, %v430_v35  ;;  %v434_v50 = vsel %vm422_vm7, %v416_v22, %v433_v24  ;;  %v1976_v35 = vld [vmem:[#allocation3 + $0x68] sm:$0xff] }
  0x4f   :  { %v435_v52 = vsel %vm421_vm9, %v432_v41, %v434_v50  ;;  %v437_v43 = vand.u32 65535, %v1954_v32  ;;  %v438_v57 = vshrl.u32 %v1954_v32, 16  ;;  %v189_v1 = vsel %vm1549_vm10, 0, %v1548_v29 }
  0x50   :  { %v335_v44 = vshll.u32 %v1946_v39, 30  ;;  %v439_v63 = vand.u32 65535, %v435_v52  ;;  %v440_v37 = vshrl.u32 %v435_v52, 16  ;;  %v462_v2 = vshrl.u32 %v431_v46, 16 }
  0x51   :  { %v461_v8 = vand.u32 65535, %v431_v46  ;;  %v194_v13 = vsub.s32 4294967266, %v189_v1  ;;  %v174_v30 = vadd.s32 %v1831_v26, %v1845_v36  ;;  %v190_v18 = vsub.s32 32, %v189_v1 }
  0x52   :  { %v1965_v61 = vsub.s32 %v332_v42, %v335_v44  ;;  %v441_v3 = vmul.u32 %v439_v63, %v437_v43  ;;  %v442_v5 = vmul.u32 %v440_v37, %v437_v43  ;;  %v1969_v6 = vmul.u32 %v439_v63, %v438_v57 }
  0x53   :  { %v444_v11 = vmul.u32 %v440_v37, %v438_v57  ;;  %v464_v56 = vmul.u32 %v462_v2, %v437_v43  ;;  %v463_v42 = vmul.u32 %v461_v8, %v437_v43  ;;  %v465_v33 = vmul.u32 %v461_v8, %v438_v57 }
  0x54   :  { %vm337_vm11 = vcmp.lt.s32.totalorder %v1965_v61, 0  ;;  %v338_v10 = vsub.s32 0, %v1965_v61  ;;  %v445_v4 = vshll.u32 %v442_v5, 16  ;;  %v447_v17 = vshll.u32 %v1969_v6, 16 }
  0x55   :  { %v467_v29 = vshll.u32 %v464_v56, 16  ;;  %v195_v31 = vadd.s32 127, %v194_v13  ;;  %v1478_v24 = vmul.f32 %v1725_v0, %v1976_v35  ;;  %v466_v46 = vmul.u32 %v462_v2, %v438_v57 }
  0x56   :  { %v339_v55 = vsel %vm337_vm11, %v338_v10, %v1965_v61  ;;  %vm449_vm12 = vc.u32 %v441_v3, %v445_v4  ;;  %v451_v19 = vadd.s32 %v445_v4, %v441_v3  ;;  %v404_v52 = vshrl.u32 %v1682_v45, %v1888_v48 }
  0x57   :  { %v340_v14 = vclz %v339_v55  ;;  %v450_v40 = vsel %vm449_vm12, 1, %v1688_v7  ;;  %v446_v43 = vshrl.u32 %v442_v5, 16  ;;  %v1482_v63 = vadd.f32 %v1478_v24, %v1734_v16  ;;  %v1986_v55 = vld [vmem:[#allocation3 + $0x38] sm:$0xff] }
  0x58   :  { %v452_v28 = vadd.s32 %v450_v40, %v444_v11  ;;  %vm453_vm13 = vc.u32 %v451_v19, %v447_v17  ;;  %v469_v36 = vshll.u32 %v465_v33, 16  ;;  %vm471_vm15 = vc.u32 %v463_v42, %v467_v29 }
  0x59   :  { %v1551_v22 = vadd.s32 4294967294, %v340_v14  ;;  %v454_v44 = vsel %vm453_vm13, 1, %v1688_v7  ;;  %v191_v37 = vshll.u32 %v1882_v38, %v189_v1  ;;  %v192_v10 = vshrl.u32 %v174_v30, %v190_v18  ;;  %1507 = vst [vmem:[#allocation8 + $0x28] sm:$0xff] %v1482_v63 }
  0x5a   :  { %v456_v26 = vadd.s32 %v454_v44, %v452_v28  ;;  %v196_v3 = vshll.u32 %v195_v31, 23  ;;  %v472_v8 = vsel %vm471_vm15, 1, %v1688_v7  ;;  %v328_v57 = vadd.s32 %v1892_v54, %v1896_v58 }
  0x5b   :  { %vm1552_vm14 = vcmp.lt.s32.totalorder %v1551_v22, 0  ;;  %v425_v48 = vsel %vm423_vm8, %v1930_v27, 2102212464  ;;  %v473_v2 = vadd.s32 %v467_v29, %v463_v42  ;;  %v474_v5 = vadd.s32 %v472_v8, %v466_v46 }
  0x5c   :  { %v343_v41 = vsel %vm1552_vm14, 0, %v1551_v22  ;;  %v448_v38 = vshrl.u32 %v1969_v6, 16  ;;  %v457_v1 = vadd.s32 %v456_v26, %v446_v43  ;;  %v424_v13 = vsel %vm420_vm6, %v404_v52, %v1926_v60 }
  0x5d   :  { %v348_v50 = vsub.s32 4294967266, %v343_v41  ;;  %v344_v11 = vsub.s32 32, %v343_v41  ;;  %v468_v14 = vshrl.u32 %v464_v56, 16  ;;  %vm475_vm0 = vc.u32 %v473_v2, %v469_v36 }
  0x5e   :  { %v545_v54 = vand.u32 2139095040, %v1986_v55  ;;  %v193_v58 = vor.u32 %v192_v10, %v191_v37  ;;  %v197_v17 = vor.u32 4788187, %v196_v3  ;;  %v426_v27 = vsel %vm422_vm7, %v1928_v25, %v425_v48 }
  0x5f   :  { %v349_v4 = vadd.s32 127, %v348_v50  ;;  %v476_v19 = vsel %vm475_vm0, 1, %v1688_v7  ;;  %v345_v22 = vshll.u32 %v1965_v61, %v343_v41  ;;  %v470_v6 = vshrl.u32 %v465_v33, 16 }
  0x60   :  { %v478_v40 = vadd.s32 %v476_v19, %v474_v5  ;;  %v546_v42 = vshrl.u32 %v545_v54, 23  ;;  %v346_v28 = vshrl.u32 %v328_v57, %v344_v11  ;;  %v2003_v60 = vadd.s32 %v457_v1, %v448_v38 }
  0x61   :  { %v350_v29 = vshll.u32 %v349_v4, 23  ;;  %v2005_v56 = vadd.s32 %v473_v2, %v469_v36  ;;  %v427_v30 = vsel %vm421_vm9, %v424_v13, %v426_v27  ;;  %v542_v31 = vand.u32 2147483647, %v1986_v55 }
  0x62   :  { %v479_v18 = vadd.s32 %v478_v40, %v468_v14  ;;  %v1556_v25 = vadd.s32 4294967169, %v546_v42  ;;  %v198_v24 = vand.u32 2147483647, %v197_v17  ;;  %v200_v44 = vcvt.s32.f32 %v193_v58 }
  0x63   :  { %v347_v33 = vor.u32 %v346_v28, %v345_v22  ;;  %v351_v41 = vor.u32 4788187, %v350_v29  ;;  %v481_v50 = vmul.u32 %v1954_v32, %v427_v30  ;;  %vm483_vm1 = vc.u32 %v2003_v60, %v2005_v56 }
  0x64   :  { %v480_v46 = vadd.s32 %v479_v18, %v470_v6  ;;  %v552_v61 = vadd.s32 1, %v1556_v25  ;;  %v549_v34 = vand.u32 8388607, %v542_v31  ;;  %v201_v36 = vmul.f32 %v200_v44, %v198_v24 }
  0x65   :  { %v352_v37 = vand.u32 2147483647, %v351_v41  ;;  %v354_v10 = vcvt.s32.f32 %v347_v33  ;;  %vm82_vm3 = vcmp.lt.s32.totalorder %v1730_v12, 0  ;;  %vm2050_vm6 = vcmp.le.f32.partialorder %v80_v15, 0.7853982 }
  0x66   :  { %v484_v52 = vadd.s32 1, %v480_v46  ;;  %vm553_vm2 = vcmp.gt.s32.totalorder %v552_v61, 0  ;;  %v550_v8 = vor.u32 8388608, %v549_v34  ;;  %v202_v27 = vxor.u32 2147483648, %v201_v36 }
  0x67   :  { %v554_v43 = vsel %vm553_vm2, %v552_v61, 0  ;;  %vm236_vm8 = vcmp.lt.s32.totalorder %v1734_v16, 0  ;;  %vm2089_vm11 = vcmp.le.f32.partialorder %v234_v20, 0.7853982  ;;  %v482_v20 = vadd.s32 %v2005_v56, %v2003_v60 }
  0x68   :  { %v485_v63 = vsel %vm483_vm1, %v484_v52, %v480_v46  ;;  %v556_v26 = vand.u32 31, %v554_v43  ;;  %v2019_v5 = vshrl.u32 %v554_v43, 5  ;;  %v203_v15 = vsel %vm82_vm3, %v202_v27, %v201_v36 }
  0x69   :  { %v486_v3 = vadd.s32 %v485_v63, %v481_v50  ;;  %v2085_v43 = vsel %vm2050_vm6, %v1730_v12, %v203_v15  ;;  %vm390_vm1 = vcmp.lt.s32.totalorder %v1738_v21, 0  ;;  %vm2135_vm2 = vcmp.le.f32.partialorder %v388_v59, 0.7853982 }
  0x6a   :  { %v2015_v57 = vsub.s32 32, %v556_v26  ;;  %v559_v32 = vshll.u32 %v1682_v45, %v556_v26  ;;  %v562_v48 = vshll.u32 %v1683_v47, %v556_v26  ;;  %v565_v11 = vshll.u32 %v1684_v49, %v556_v26 }
  0x6b   :  { %v487_v2 = vadd.s32 536870912, %v486_v3  ;;  %v568_v4 = vshll.u32 %v1685_v51, %v556_v26  ;;  %v571_v14 = vshll.u32 %v1686_v53, %v556_v26  ;;  %vm574_vm4 = vcmp.lt.s32.totalorder %v2019_v5, 1 }
  0x6c   :  { %v560_v38 = vshrl.u32 %v1683_v47, %v2015_v57  ;;  %v563_v1 = vshrl.u32 %v1684_v49, %v2015_v57  ;;  %v566_v13 = vshrl.u32 %v1685_v51, %v2015_v57  ;;  %v569_v58 = vshrl.u32 %v1686_v53, %v2015_v57 }
  0x6d   :  { %v2030_v54 = vshrl.u32 %v487_v2, 30  ;;  %v572_v17 = vshrl.u32 %v1687_v62, %v2015_v57  ;;  %v355_v49 = vmul.f32 %v354_v10, %v352_v37  ;;  %vm577_vm5 = vcmp.lt.s32.totalorder %v2019_v5, 4 }
  0x6e   :  { %v2037_v47 = vor.u32 %v560_v38, %v559_v32  ;;  %v2039_v19 = vor.u32 %v563_v1, %v562_v48  ;;  %v570_v22 = vor.u32 %v569_v58, %v568_v4  ;;  %v2043_v6 = vor.u32 %v566_v13, %v565_v11 }
  0x6f   :  { %v489_v51 = vshll.u32 %v2030_v54, 30  ;;  %v573_v40 = vor.u32 %v572_v17, %v571_v14  ;;  %v2046_v53 = vshll.u32 %v550_v8, 8  ;;  %vm576_vm7 = vcmp.lt.s32.totalorder %v2019_v5, 3  ;;  %v2095_v8 = vld [vmem:[#allocation3 + $0x70] sm:$0xff] }
  0x70   :  { %vm575_vm9 = vcmp.lt.s32.totalorder %v2019_v5, 2  ;;  %v582_v28 = vsel %vm574_vm4, %v2037_v47, %v2039_v19  ;;  %v583_v29 = vsel %vm577_vm5, %v570_v22, 920167782  ;;  %v356_v30 = vxor.u32 2147483648, %v355_v49 }
  0x71   :  { %v490_v42 = vsub.s32 %v486_v3, %v489_v51  ;;  %v584_v25 = vsel %vm576_vm7, %v2043_v6, %v583_v29  ;;  %v586_v24 = vsel %vm574_vm4, %v2039_v19, %v2043_v6  ;;  %v587_v44 = vsel %vm577_vm5, %v573_v40, 1326507024 }
  0x72   :  { %v591_v46 = vand.u32 65535, %v2046_v53  ;;  %v585_v33 = vsel %vm575_vm9, %v582_v28, %v584_v25  ;;  %v588_v41 = vsel %vm576_vm7, %v570_v22, %v587_v44  ;;  %v592_v50 = vshrl.u32 %v2046_v53, 16 }
  0x73   :  { %vm491_vm10 = vcmp.lt.s32.totalorder %v490_v42, 0  ;;  %v492_v18 = vsub.s32 0, %v490_v42  ;;  %v589_v34 = vsel %vm575_vm9, %v586_v24, %v588_v41  ;;  %v616_v36 = vshrl.u32 %v585_v33, 16 }
  0x74   :  { %v593_v63 = vand.u32 65535, %v589_v34  ;;  %v594_v26 = vshrl.u32 %v589_v34, 16  ;;  %v357_v10 = vsel %vm236_vm8, %v356_v30, %v355_v49  ;;  %v615_v11 = vand.u32 65535, %v585_v33 }
  0x75   :  { %v493_v61 = vsel %vm491_vm10, %v492_v18, %v490_v42  ;;  %v2099_v4 = vmul.f32 %v2085_v43, %v2085_v43  ;;  %v1479_v38 = vmul.f32 %v1725_v0, %v2095_v8  ;;  %v618_v58 = vmul.u32 %v616_v36, %v591_v46 }
  0x76   :  { %v494_v52 = vclz %v493_v61  ;;  %v595_v32 = vmul.u32 %v593_v63, %v591_v46  ;;  %v596_v48 = vmul.u32 %v594_v26, %v591_v46  ;;  %v597_v2 = vmul.u32 %v593_v63, %v592_v50 }
  0x77   :  { %v598_v13 = vmul.u32 %v594_v26, %v592_v50  ;;  %v2108_v17 = vsel %vm2089_vm11, %v1734_v16, %v357_v10  ;;  %v1483_v22 = vadd.f32 %v1479_v38, %v1738_v21  ;;  %v617_v60 = vmul.u32 %v615_v11, %v591_v46 }
  0x78   :  { %v1554_v3 = vadd.s32 4294967294, %v494_v52  ;;  %v599_v14 = vshll.u32 %v596_v48, 16  ;;  %v601_v40 = vshll.u32 %v597_v2, 16  ;;  %v619_v18 = vmul.u32 %v615_v11, %v592_v50 }
  0x79   :  { %1508 = vst [vmem:[#allocation8 + $0x30] sm:$0xff] %v1483_v22  ;;  %v620_v25 = vmul.u32 %v616_v36, %v592_v50  ;;  %v621_v24 = vshll.u32 %v618_v58, 16  ;;  %v600_v33 = vshrl.u32 %v596_v48, 16  ;;  %v2118_v50 = vmul.f32 %v2108_v17, %v2108_v17 }
  0x7a   :  { %vm1555_vm12 = vcmp.lt.s32.totalorder %v1554_v3, 0  ;;  %vm603_vm13 = vc.u32 %v595_v32, %v599_v14  ;;  %v605_v15 = vadd.s32 %v599_v14, %v595_v32  ;;  %v623_v46 = vshll.u32 %v619_v18, 16 }
  0x7b   :  { %v497_v1 = vsel %vm1555_vm12, 0, %v1554_v3  ;;  %v604_v29 = vsel %vm603_vm13, 1, %v1688_v7  ;;  %vm625_vm15 = vc.u32 %v617_v60, %v621_v24  ;;  %v579_v36 = vsel %vm577_vm5, %v2043_v6, 2102212464 }
  0x7c   :  { %v498_v27 = vsub.s32 32, %v497_v1  ;;  %v499_v49 = vshll.u32 %v490_v42, %v497_v1  ;;  %v502_v51 = vsub.s32 4294967266, %v497_v1  ;;  %v606_v30 = vadd.s32 %v604_v29, %v598_v13 }
  0x7d   :  { %vm607_vm14 = vc.u32 %v605_v15, %v601_v40  ;;  %v558_v42 = vshrl.u32 %v1682_v45, %v2015_v57  ;;  %v626_v26 = vsel %vm625_vm15, 1, %v1688_v7  ;;  %v627_v10 = vadd.s32 %v621_v24, %v617_v60 }
  0x7e   :  { %v500_v56 = vshrl.u32 %v482_v20, %v498_v27  ;;  %v503_v28 = vadd.s32 127, %v502_v51  ;;  %v608_v41 = vsel %vm607_vm14, 1, %v1688_v7  ;;  %v628_v3 = vadd.s32 %v626_v26, %v620_v25 }
  0x7f   :  { %v610_v63 = vadd.s32 %v608_v41, %v606_v30  ;;  %v602_v57 = vshrl.u32 %v597_v2, 16  ;;  %v216_v48 = vmul.f32 -0.00019511016, %v2099_v4  ;;  %v622_v11 = vshrl.u32 %v618_v58, 16 }
  0x80   :  { %v501_v44 = vor.u32 %v500_v56, %v499_v49  ;;  %v504_v61 = vshll.u32 %v503_v28, 23  ;;  %vm629_vm0 = vc.u32 %v627_v10, %v623_v46  ;;  %v578_v38 = vsel %vm574_vm4, %v558_v42, %v2037_v47 }
  0x81   :  { %v611_v32 = vadd.s32 %v610_v63, %v600_v33  ;;  %v580_v1 = vsel %vm576_vm7, %v2039_v19, %v579_v36  ;;  %v630_v6 = vsel %vm629_vm0, 1, %v1688_v7  ;;  %v370_v13 = vmul.f32 -0.00019511016, %v2118_v50 }
  0x82   :  { %v505_v52 = vor.u32 4788187, %v504_v61  ;;  %v508_v34 = vcvt.s32.f32 %v501_v44  ;;  %v624_v2 = vshrl.u32 %v619_v18, 16  ;;  %v632_v14 = vadd.s32 %v630_v6, %v628_v3 }
  0x83   :  { %v2139_v47 = vadd.s32 %v611_v32, %v602_v57  ;;  %v2141_v49 = vadd.s32 %v627_v10, %v623_v46  ;;  %v217_v19 = vadd.f32 0.008332121, %v216_v48  ;;  %v581_v7 = vsel %vm575_vm9, %v578_v38, %v580_v1 }
  0x84   :  { %v506_v45 = vand.u32 2147483647, %v505_v52  ;;  %v633_v51 = vadd.s32 %v632_v14, %v622_v11  ;;  %v371_v40 = vadd.f32 0.008332121, %v370_v13  ;;  %v204_v56 = vsub.s32 4, %v1876_v23 }
  0x85   :  { %v635_v5 = vmul.u32 %v2046_v53, %v581_v7  ;;  %vm637_vm4 = vc.u32 %v2139_v47, %v2141_v49  ;;  %v218_v29 = vmul.f32 %v217_v19, %v2099_v4  ;;  %v358_v18 = vsub.s32 4, %v1946_v39 }
  0x86   :  { %v509_v20 = vmul.f32 %v508_v34, %v506_v45  ;;  %v634_v60 = vadd.s32 %v633_v51, %v624_v2  ;;  %v372_v25 = vmul.f32 %v371_v40, %v2118_v50  ;;  %v205_v44 = vsel %vm82_vm3, %v204_v56, %v1876_v23 }
  0x87   :  { %v219_v53 = vadd.f32 -0.16666654, %v218_v29  ;;  %v512_v42 = vsub.s32 4, %v2030_v54  ;;  %v207_v52 = vsel %vm2050_vm6, 0, %v205_v44  ;;  %v359_v34 = vsel %vm236_vm8, %v358_v18, %v1946_v39 }
  0x88   :  { %v510_v27 = vxor.u32 2147483648, %v509_v20  ;;  %v638_v15 = vadd.s32 1, %v634_v60  ;;  %v373_v63 = vadd.f32 -0.16666654, %v372_v25  ;;  %v840_v26 = vadd.s32 3, %v207_v52 }
  0x89   :  { %v220_v23 = vmul.f32 %v219_v53, %v2099_v4  ;;  %v2175_v10 = vand.u32 3, %v207_v52  ;;  %v361_v3 = vsel %vm2089_vm11, 0, %v359_v34  ;;  %v513_v62 = vsel %vm390_vm1, %v512_v42, %v2030_v54  ;;  %v2216_v53 = vld [vmem:[#allocation3 + $0x78] sm:$0xff]  ;;  %v1591_v34 = vld [vmem:[#allocation3 + $0x20] sm:$0xff] }
  0x8a   :  { %v511_v22 = vsel %vm390_vm1, %v510_v27, %v509_v20  ;;  %v639_v24 = vsel %vm637_vm4, %v638_v15, %v634_v60  ;;  %v374_v57 = vmul.f32 %v373_v63, %v2118_v50  ;;  %v209_v16 = vmul.f32 -0.001358992, %v2099_v4 }
  0x8b   :  { %v2150_v59 = vsel %vm2135_vm2, %v1738_v21, %v511_v22  ;;  %v640_v33 = vadd.s32 %v639_v24, %v635_v5  ;;  %v363_v39 = vmul.f32 -0.001358992, %v2118_v50  ;;  %v2186_v48 = vand.u32 3, %v840_v26 }
  0x8c   :  { %v2155_v28 = vmul.f32 %v2150_v59, %v2150_v59  ;;  %v995_v11 = vadd.s32 3, %v361_v3  ;;  %v221_v38 = vadd.f32 1.0, %v220_v23  ;;  %v210_v6 = vadd.f32 0.041655596, %v209_v16 }
  0x8d   :  { %v641_v46 = vadd.s32 536870912, %v640_v33  ;;  %v364_v21 = vadd.f32 0.041655596, %v363_v39  ;;  %v515_v54 = vsel %vm2135_vm2, 0, %v513_v62  ;;  %v375_v14 = vadd.f32 1.0, %v374_v57 }
  0x8e   :  { %v524_v30 = vmul.f32 -0.00019511016, %v2155_v28  ;;  %v517_v32 = vmul.f32 -0.001358992, %v2155_v28  ;;  %vm544_vm5 = vcmp.lt.s32.totalorder %v1986_v55, 0  ;;  %v211_v27 = vmul.f32 %v210_v6, %v2099_v4 }
  0x8f   :  { %v642_v12 = vshrl.u32 %v641_v46, 30  ;;  %v365_v19 = vmul.f32 %v364_v21, %v2118_v50  ;;  %v1150_v51 = vadd.s32 3, %v515_v54  ;;  %v222_v29 = vmul.f32 %v221_v38, %v2085_v43 }
  0x90   :  { %v525_v61 = vadd.f32 0.008332121, %v524_v30  ;;  %v518_v2 = vadd.f32 0.041655596, %v517_v32  ;;  %v212_v56 = vadd.f32 -0.4999988, %v211_v27  ;;  %v2203_v25 = vmul.f32 %v375_v14, %v2108_v17 }
  0x91   :  { %v643_v45 = vshll.u32 %v642_v12, 30  ;;  %v666_v1 = vsub.s32 4, %v642_v12  ;;  %v366_v5 = vadd.f32 -0.4999988, %v365_v19  ;;  %v2198_v15 = vand.u32 3, %v361_v3 }
  0x92   :  { %v526_v41 = vmul.f32 %v525_v61, %v2155_v28  ;;  %v519_v40 = vmul.f32 %v518_v2, %v2155_v28  ;;  %v2200_v30 = vand.u32 3, %v995_v11  ;;  %vm2207_vm6 = vcmp.le.f32.partialorder %v542_v31, 0.7853982  ;;  %v2243_v11 = vld [vmem:[#allocation3 + $0x40] sm:$0xff] }
  0x93   :  { %v644_v37 = vsub.s32 %v640_v33, %v643_v45  ;;  %v667_v58 = vsel %vm544_vm5, %v666_v1, %v642_v12  ;;  %v213_v61 = vmul.f32 %v212_v56, %v2099_v4  ;;  %v2212_v33 = vand.u32 3, %v515_v54 }
  0x94   :  { %v527_v36 = vadd.f32 -0.16666654, %v526_v41  ;;  %v520_v18 = vadd.f32 -0.4999988, %v519_v40  ;;  %v2214_v43 = vand.u32 3, %v1150_v51  ;;  %v636_v42 = vadd.s32 %v2141_v49, %v2139_v47 }
  0x95   :  { %vm645_vm3 = vcmp.lt.s32.totalorder %v644_v37, 0  ;;  %v646_v13 = vsub.s32 0, %v644_v37  ;;  %v2222_v17 = vsel %vm2207_vm6, 0, %v667_v58  ;;  %v1480_v4 = vmul.f32 %v1725_v0, %v2216_v53  ;;  %v49_v58 = vld [vmem:[#allocation6] sm:$0xff] }
  0x96   :  { %v528_v20 = vmul.f32 %v527_v36, %v2155_v28  ;;  %v367_v41 = vmul.f32 %v366_v5, %v2118_v50  ;;  %v214_v52 = vadd.f32 1.0, %v213_v61  ;;  %vm223_vm8 = vweird.f32 %v1591_v34 }
  0x97   :  { %v647_v22 = vsel %vm645_vm3, %v646_v13, %v644_v37  ;;  %v2231_v63 = vmul.f32 %v520_v18, %v2155_v28  ;;  %vm225_vm9 = vcmp.lt.s32.totalorder %v2175_v10, 2  ;;  %vm226_vm10 = vcmp.eq.s32.totalorder %v2175_v10, 0  ;;  %v55_v18 = vld [vmem:[#allocation6 + $0x20] sm:$0xff] }
  0x98   :  { %v529_v7 = vadd.f32 1.0, %v528_v20  ;;  %v648_v60 = vclz %v647_v22  ;;  %v227_v36 = vxor.u32 2147483648, %v222_v29  ;;  %vm229_vm11 = vcmp.eq.s32.totalorder %v2175_v10, 2 }
  0x99   :  { %v230_v23 = vxor.u32 2147483648, %v214_v52  ;;  %vm842_vm12 = vcmp.lt.s32.totalorder %v2186_v48, 2  ;;  %vm843_vm13 = vcmp.eq.s32.totalorder %v2186_v48, 0  ;;  %vm846_vm14 = vcmp.eq.s32.totalorder %v2186_v48, 2 }
  0x9a   :  { %v1557_v44 = vadd.s32 4294967294, %v648_v60  ;;  %v2225_v31 = vmul.f32 %v529_v7, %v2150_v59  ;;  %v1484_v59 = vadd.f32 %v1480_v4, %v1986_v55  ;;  %v228_v28 = vsel %vm226_vm10, %v214_v52, %v227_v36  ;;  %v1593_v7 = vld [vmem:[#allocation3 + $0x28] sm:$0xff] }
  0x9b   :  { %v1364_v3 = vsub.f32 0.0, %v1916_v9  ;;  %v231_v57 = vsel %vm229_vm11, %v230_v23, %v222_v29  ;;  %v845_v16 = vsel %vm843_vm13, %v214_v52, %v227_v36  ;;  %v848_v32 = vsel %vm846_vm14, %v230_v23, %v222_v29 }
  0x9c   :  { %vm1558_vm7 = vcmp.lt.s32.totalorder %v1557_v44, 0  ;;  %1509 = vst [vmem:[#allocation8 + $0x38] sm:$0xff] %v1484_v59  ;;  %v232_v39 = vsel %vm225_vm9, %v228_v28, %v231_v57  ;;  %v1368_v20 = vmul.f32 2.0, %v2243_v11  ;;  %v849_v21 = vsel %vm842_vm12, %v845_v16, %v848_v32 }
  0x9d   :  { %v651_v46 = vsel %vm1558_vm7, 0, %v1557_v44  ;;  %v2249_v6 = vsel %vm223_vm8, nan, %v232_v39  ;;  %v850_v54 = vsel %vm223_vm8, nan, %v849_v21  ;;  %v1384_v27 = vmul.f32 0.05, %v2243_v11 }
  0x9e   :  { %v652_v47 = vsub.s32 32, %v651_v46  ;;  %v653_v49 = vshll.u32 %v644_v37, %v651_v46  ;;  %v656_v26 = vsub.s32 4294967266, %v651_v46  ;;  %v1380_v37 = vmul.f32 %v2243_v11, %v2243_v11 }
  0x9f   :  { %v1316_v10 = vmul.f32 0.048, %v2249_v6  ;;  %v1336_v13 = vmul.f32 0.002304, %v2249_v6  ;;  %v1372_v2 = vadd.f32 %v1368_v20, %v1916_v9  ;;  %v1388_v19 = vmul.f32 0.025, %v1916_v9 }
  0xa0   :  { %v654_v50 = vshrl.u32 %v636_v42, %v652_v47  ;;  %v657_v12 = vadd.s32 127, %v656_v26  ;;  %vm377_vm15 = vweird.f32 %v1593_v7  ;;  %v1396_v40 = vmul.f32 0.025, %v2243_v11 }
  0xa1   :  { %v2259_v51 = vadd.f32 0.045, %v1316_v10  ;;  %v1340_v48 = vmul.f32 %v1336_v13, %v2249_v6  ;;  %v1376_v22 = vmul.f32 %v1372_v2, %v1364_v3  ;;  %v1392_v56 = vadd.f32 %v1388_v19, %v1384_v27 }
  0xa2   :  { %v655_v62 = vor.u32 %v654_v50, %v653_v49  ;;  %v658_v45 = vshll.u32 %v657_v12, 23  ;;  %v1400_v5 = vmul.f32 0.05, %v1916_v9  ;;  %v1408_v29 = vmul.f32 0.048, %v850_v54 }
  0xa3   :  { %v1324_v44 = vsub.f32 0.0, %v2259_v51  ;;  %v1344_v61 = vsub.f32 0.005625, %v1340_v48  ;;  %v368_v42 = vadd.f32 1.0, %v367_v41  ;;  %vm379_vm0 = vcmp.lt.s32.totalorder %v2198_v15, 2 }
  0xa4   :  { %v659_v38 = vor.u32 4788187, %v658_v45  ;;  %v662_v1 = vcvt.s32.f32 %v655_v62  ;;  %v1404_v46 = vadd.f32 %v1400_v5, %v1396_v40  ;;  %v1412_v52 = vmul.f32 %v1408_v29, %v1376_v22 }
  0xa5   :  { %v1424_v34 = vmul.f32 %v1408_v29, %v1380_v37  ;;  %1583 = vrcp.f32 %v1344_v61  ;;  %vm380_vm1 = vcmp.eq.s32.totalorder %v2198_v15, 0  ;;  %v381_v47 = vxor.u32 2147483648, %v2203_v25 }
  0xa6   :  { %v660_v14 = vand.u32 2147483647, %v659_v38  ;;  %vm383_vm2 = vcmp.eq.s32.totalorder %v2198_v15, 2  ;;  %v1416_v49 = vsub.f32 %v49_v58, %v1412_v52  ;;  %v384_v59 = vxor.u32 2147483648, %v368_v42  ;;  %v2302_v38 = vld [vmem:[#allocation3 + $0x48] sm:$0xff] }
  0xa7   :  { %v1428_v26 = vsub.f32 %v55_v18, %v1424_v34  ;;  %v382_v36 = vsel %vm380_vm1, %v368_v42, %v381_v47  ;;  %vm997_vm4 = vcmp.lt.s32.totalorder %v2200_v30, 2  ;;  %vm998_vm3 = vcmp.eq.s32.totalorder %v2200_v30, 0  ;;  %v50_v34 = vld [vmem:[#allocation6 + $0x8] sm:$0xff] }
  0xa8   :  { %v663_v60 = vmul.f32 %v662_v1, %v660_v14  ;;  %v2282_v12 = vsub.f32 %v1416_v49, %v1392_v56  ;;  %v385_v28 = vsel %vm383_vm2, %v384_v59, %v2203_v25  ;;  %v1000_v3 = vsel %vm998_vm3, %v368_v42, %v381_v47  ;;  %v56_v47 = vld [vmem:[#allocation6 + $0x28] sm:$0xff] }
  0xa9   :  { %v2284_v23 = vsub.f32 %v1428_v26, %v1404_v46  ;;  %v386_v24 = vsel %vm379_vm0, %v382_v36, %v385_v28  ;;  %v1365_v62 = vsub.f32 0.0, %v1976_v35  ;;  %v1369_v1 = vmul.f32 2.0, %v2302_v38 }
  0xaa   :  { %v664_v4 = vxor.u32 2147483648, %v663_v60  ;;  %v1436_v57 = vmul.f32 0.045, %v2282_v12  ;;  %v2297_v39 = vsel %vm377_vm15, nan, %v386_v24  ;;  %v2306_v54 = vand.u32 3, %v2222_v17 }
  0xab   :  { %v1440_v16 = vmul.f32 %v2284_v23, %v1324_v44  ;;  %v1584_v32 = vpop.eup %1583  ;;  %v1317_v20 = vmul.f32 0.048, %v2297_v39  ;;  %v1337_v37 = vmul.f32 0.002304, %v2297_v39  ;;  %v1373_v27 = vadd.f32 %v1369_v1, %v1976_v35 }
  0xac   :  { %v665_v9 = vsel %vm544_vm5, %v664_v4, %v663_v60  ;;  %vm1001_vm5 = vcmp.eq.s32.totalorder %v2200_v30, 2  ;;  %v1352_v10 = vmul.f32 %v1584_v32, %v1344_v61  ;;  %v1385_v40 = vmul.f32 0.05, %v2302_v38 }
  0xad   :  { %v2274_v41 = vsel %vm2207_vm6, %v1986_v55, %v665_v9  ;;  %v1003_v15 = vsel %vm1001_vm5, %v384_v59, %v2203_v25  ;;  %v1444_v2 = vadd.f32 %v1440_v16, %v1436_v57  ;;  %v1341_v25 = vmul.f32 %v1337_v37, %v2297_v39 }
  0xae   :  { %v2280_v50 = vmul.f32 %v2274_v41, %v2274_v41  ;;  %v1004_v13 = vsel %vm997_vm4, %v1000_v3, %v1003_v15  ;;  %v1356_v48 = vsub.f32 2.0, %v1352_v10  ;;  %v2314_v22 = vadd.f32 0.045, %v1317_v20 }
  0xaf   :  { %v1005_v14 = vsel %vm377_vm15, nan, %v1004_v13  ;;  %v1345_v60 = vsub.f32 0.005625, %v1341_v25  ;;  %v1377_v58 = vmul.f32 %v1373_v27, %v1365_v62  ;;  %v1381_v30 = vmul.f32 %v2302_v38, %v2302_v38 }
  0xb0   :  { %v678_v45 = vmul.f32 -0.00019511016, %v2280_v50  ;;  %v1389_v56 = vmul.f32 0.025, %v1976_v35  ;;  %v2320_v5 = vmul.f32 %v1584_v32, %v1356_v48  ;;  %v1397_v29 = vmul.f32 0.025, %v2302_v38 }
  0xb1   :  { %v1401_v18 = vmul.f32 0.05, %v1976_v35  ;;  %v2325_v61 = vadd.s32 3, %v2222_v17  ;;  %1585 = vrcp.f32 %v1345_v60  ;;  %v1409_v42 = vmul.f32 0.048, %v1005_v14  ;;  %v1595_v17 = vld [vmem:[#allocation3 + $0x30] sm:$0xff] }
  0xb2   :  { %v679_v21 = vadd.f32 0.008332121, %v678_v45  ;;  %v522_v4 = vadd.f32 1.0, %v2231_v63  ;;  %v1448_v52 = vmul.f32 %v1444_v2, %v2320_v5  ;;  %v1325_v9 = vsub.f32 0.0, %v2314_v22 }
  0xb3   :  { %v1393_v49 = vadd.f32 %v1389_v56, %v1385_v40  ;;  %v1405_v26 = vadd.f32 %v1401_v18, %v1397_v29  ;;  %v1413_v59 = vmul.f32 %v1409_v42, %v1377_v58  ;;  %v1425_v36 = vmul.f32 %v1409_v42, %v1381_v30 }
  0xb4   :  { %v680_v19 = vmul.f32 %v679_v21, %v2280_v50  ;;  %vm534_vm6 = vcmp.eq.s32.totalorder %v2212_v33, 0  ;;  %v1485_v35 = vmul.f32 %v1725_v0, %v1448_v52  ;;  %vm531_vm7 = vweird.f32 %v1595_v17  ;;  %v51_v17 = vld [vmem:[#allocation6 + $0x10] sm:$0xff] }
  0xb5   :  { %v535_v63 = vxor.u32 2147483648, %v2225_v31  ;;  %vm537_vm8 = vcmp.eq.s32.totalorder %v2212_v33, 2  ;;  %v1417_v28 = vsub.f32 %v50_v34, %v1413_v59  ;;  %v1429_v24 = vsub.f32 %v56_v47, %v1425_v36 }
  0xb6   :  { %v681_v7 = vadd.f32 -0.16666654, %v680_v19  ;;  %vm533_vm9 = vcmp.lt.s32.totalorder %v2212_v33, 2  ;;  %v538_v3 = vxor.u32 2147483648, %v522_v4  ;;  %v1489_v62 = vadd.f32 %v2243_v11, %v1485_v35 }
  0xb7   :  { %v536_v45 = vsel %vm534_vm6, %v522_v4, %v535_v63  ;;  %vm1152_vm10 = vcmp.lt.s32.totalorder %v2214_v43, 2  ;;  %vm1153_vm11 = vcmp.eq.s32.totalorder %v2214_v43, 0  ;;  %v1586_v57 = vpop.eup %1585  ;;  %v2339_v16 = vsub.f32 %v1417_v28, %v1393_v49 }
  0xb8   :  { %v682_v46 = vmul.f32 %v681_v7, %v2280_v50  ;;  %v2341_v32 = vsub.f32 %v1429_v24, %v1405_v26  ;;  %v539_v15 = vsel %vm537_vm8, %v538_v3, %v2225_v31  ;;  %v1155_v20 = vsel %vm1153_vm11, %v522_v4, %v535_v63  ;;  %1511 = vst [vmem:[#allocation8 + $0x40] sm:$0xff] %v1489_v62  ;;  %v57_v26 = vld [vmem:[#allocation6 + $0x30] sm:$0xff] }
  0xb9   :  { %v1353_v1 = vmul.f32 %v1586_v57, %v1345_v60  ;;  %v540_v33 = vsel %vm533_vm9, %v536_v45, %v539_v15  ;;  %vm1156_vm12 = vcmp.eq.s32.totalorder %v2214_v43, 2  ;;  %v1437_v11 = vmul.f32 0.045, %v2339_v16  ;;  %v2359_v60 = vld [vmem:[#allocation3 + $0x50] sm:$0xff] }
  0xba   :  { %v683_v37 = vadd.f32 1.0, %v682_v46  ;;  %v1441_v21 = vmul.f32 %v2341_v32, %v1325_v9  ;;  %v2350_v10 = vsel %vm531_vm7, nan, %v540_v33  ;;  %v1158_v13 = vsel %vm1156_vm12, %v538_v3, %v2225_v31 }
  0xbb   :  { %v1357_v2 = vsub.f32 2.0, %v1353_v1  ;;  %v1159_v14 = vsel %vm1152_vm10, %v1155_v20, %v1158_v13  ;;  %v1318_v25 = vmul.f32 0.048, %v2350_v10  ;;  %v1338_v27 = vmul.f32 0.002304, %v2350_v10  ;;  %v2393_v1 = vld [vmem:[#allocation3 + $0x58] sm:$0xff] }
  0xbc   :  { %v1445_v19 = vadd.f32 %v1441_v21, %v1437_v11  ;;  %v1160_v48 = vsel %vm531_vm7, nan, %v1159_v14  ;;  %v1366_v40 = vsub.f32 0.0, %v2095_v8  ;;  %v1370_v58 = vmul.f32 2.0, %v2359_v60 }
  0xbd   :  { %v2362_v30 = vmul.f32 %v1586_v57, %v1357_v2  ;;  %v1342_v31 = vmul.f32 %v1338_v27, %v2350_v10  ;;  %v1382_v43 = vmul.f32 %v2359_v60, %v2359_v60  ;;  %v1386_v56 = vmul.f32 0.05, %v2359_v60 }
  0xbe   :  { %v1374_v7 = vadd.f32 %v1370_v58, %v2095_v8  ;;  %v1390_v29 = vmul.f32 0.025, %v2095_v8  ;;  %v1398_v18 = vmul.f32 0.025, %v2359_v60  ;;  %v1402_v42 = vmul.f32 0.05, %v2095_v8 }
  0xbf   :  { %v1449_v4 = vmul.f32 %v1445_v19, %v2362_v30  ;;  %v2373_v46 = vadd.f32 0.045, %v1318_v25  ;;  %v1346_v52 = vsub.f32 0.005625, %v1342_v31  ;;  %v1410_v34 = vmul.f32 0.048, %v1160_v48 }
  0xc0   :  { %v2376_v47 = vmul.f32 %v683_v37, %v2274_v41  ;;  %v2379_v49 = vand.u32 3, %v2325_v61  ;;  %v1378_v59 = vmul.f32 %v1374_v7, %v1366_v40  ;;  %v671_v36 = vmul.f32 -0.001358992, %v2280_v50 }
  0xc1   :  { %v1486_v35 = vmul.f32 %v1725_v0, %v1449_v4  ;;  %1587 = vrcp.f32 %v1346_v52  ;;  %v1406_v63 = vadd.f32 %v1402_v42, %v1398_v18  ;;  %v1426_v28 = vmul.f32 %v1410_v34, %v1382_v43 }
  0xc2   :  { %v1394_v24 = vadd.f32 %v1390_v29, %v1386_v56  ;;  %v1414_v3 = vmul.f32 %v1410_v34, %v1378_v59  ;;  %v672_v62 = vadd.f32 0.041655596, %v671_v36  ;;  %v1326_v41 = vsub.f32 0.0, %v2373_v46 }
  0xc3   :  { %v1490_v45 = vadd.f32 %v2302_v38, %v1486_v35  ;;  %v1430_v57 = vsub.f32 %v57_v26, %v1426_v28  ;;  %vm688_vm13 = vcmp.eq.s32.totalorder %v2306_v54, 0  ;;  %vm687_vm14 = vcmp.lt.s32.totalorder %v2306_v54, 2 }
  0xc4   :  { %v1418_v61 = vsub.f32 %v51_v17, %v1414_v3  ;;  %v673_v15 = vmul.f32 %v672_v62, %v2280_v50  ;;  %v689_v20 = vxor.u32 2147483648, %v2376_v47  ;;  %vm691_vm15 = vcmp.eq.s32.totalorder %v2306_v54, 2 }
  0xc5   :  { %1512 = vst [vmem:[#allocation8 + $0x48] sm:$0xff] %v1490_v45  ;;  %v1434_v37 = vsub.f32 %v1430_v57, %v1406_v63  ;;  %vm685_vm0 = vweird.f32 %v1986_v55  ;;  %vm1307_vm1 = vcmp.lt.s32.totalorder %v2379_v49, 2  ;;  %v1367_v38 = vsub.f32 0.0, %v2216_v53  ;;  %v52_v57 = vld [vmem:[#allocation6 + $0x18] sm:$0xff] }
  0xc6   :  { %v1371_v33 = vmul.f32 2.0, %v2393_v1  ;;  %v1422_v11 = vsub.f32 %v1418_v61, %v1394_v24  ;;  %v674_v21 = vadd.f32 -0.4999988, %v673_v15  ;;  %vm1308_vm2 = vcmp.eq.s32.totalorder %v2379_v49, 0  ;;  %v58_v61 = vld [vmem:[#allocation6 + $0x38] sm:$0xff] }
  0xc7   :  { %v1387_v13 = vmul.f32 0.05, %v2393_v1  ;;  %v1588_v2 = vpop.eup %1587  ;;  %v1442_v14 = vmul.f32 %v1434_v37, %v1326_v41  ;;  %vm1311_vm4 = vcmp.eq.s32.totalorder %v2379_v49, 2  ;;  %v1391_v27 = vmul.f32 0.025, %v2216_v53 }
  0xc8   :  { %v1375_v25 = vadd.f32 %v1371_v33, %v2216_v53  ;;  %v1354_v19 = vmul.f32 %v1588_v2, %v1346_v52  ;;  %v1438_v48 = vmul.f32 0.045, %v1422_v11  ;;  %v675_v40 = vmul.f32 %v674_v21, %v2280_v50 }
  0xc9   :  { %v1383_v58 = vmul.f32 %v2393_v1, %v2393_v1  ;;  %v1399_v43 = vmul.f32 0.025, %v2393_v1  ;;  %v1403_v56 = vmul.f32 0.05, %v2216_v53  ;;  %v1328_v7 = vmul.f32 0.096, %v2249_v6 }
  0xca   :  { %v1379_v31 = vmul.f32 %v1375_v25, %v1367_v38  ;;  %v1358_v29 = vsub.f32 2.0, %v1354_v19  ;;  %v1446_v18 = vadd.f32 %v1442_v14, %v1438_v48  ;;  %v676_v42 = vadd.f32 1.0, %v675_v40 }
  0xcb   :  { %v1395_v4 = vadd.f32 %v1391_v27, %v1387_v13  ;;  %v1332_v46 = vadd.f32 0.17, %v1328_v7  ;;  %v1452_v52 = vmul.f32 %v2282_v12, %v1324_v44  ;;  %v1329_v50 = vmul.f32 0.096, %v2297_v39 }
  0xcc   :  { %v1330_v34 = vmul.f32 0.096, %v2350_v10  ;;  %v1362_v26 = vmul.f32 %v1588_v2, %v1358_v29  ;;  %v690_v59 = vsel %vm688_vm13, %v676_v42, %v689_v20  ;;  %v692_v36 = vxor.u32 2147483648, %v676_v42 }
  0xcd   :  { %v1310_v6 = vsel %vm1308_vm2, %v676_v42, %v689_v20  ;;  %v1456_v35 = vmul.f32 %v2284_v23, %v1332_v46  ;;  %v1333_v17 = vadd.f32 0.17, %v1329_v50  ;;  %v1453_v51 = vmul.f32 %v2339_v16, %v1325_v9 }
  0xce   :  { %v1334_v44 = vadd.f32 0.17, %v1330_v34  ;;  %v1450_v12 = vmul.f32 %v1446_v18, %v1362_v26  ;;  %v693_v39 = vsel %vm691_vm15, %v692_v36, %v2376_v47  ;;  %v1313_v10 = vsel %vm1311_vm4, %v692_v36, %v2376_v47 }
  0xcf   :  { %v1454_v63 = vmul.f32 %v1422_v11, %v1326_v41  ;;  %v694_v28 = vsel %vm687_vm14, %v690_v59, %v693_v39  ;;  %v1314_v23 = vsel %vm1307_vm1, %v1310_v6, %v1313_v10  ;;  %v1460_v22 = vadd.f32 %v1456_v35, %v1452_v52 }
  0xd0   :  { %v1457_v9 = vmul.f32 %v2341_v32, %v1333_v17  ;;  %v1487_v16 = vmul.f32 %v1725_v0, %v1450_v12  ;;  %v695_v24 = vsel %vm685_vm0, nan, %v694_v28  ;;  %v1315_v3 = vsel %vm685_vm0, nan, %v1314_v23 }
  0xd1   :  { %v1458_v62 = vmul.f32 %v1434_v37, %v1334_v44  ;;  %v1319_v47 = vmul.f32 0.048, %v695_v24  ;;  %v1339_v45 = vmul.f32 0.002304, %v695_v24  ;;  %v1411_v41 = vmul.f32 0.048, %v1315_v3 }
  0xd2   :  { %v1464_v54 = vmul.f32 %v1460_v22, %v2320_v5  ;;  %v1491_v49 = vadd.f32 %v2359_v60, %v1487_v16  ;;  %v1461_v15 = vadd.f32 %v1457_v9, %v1453_v51  ;;  %v1331_v20 = vmul.f32 0.096, %v695_v24  ;;  %v1598_v60 = vld [vmem:[#allocation3 + $0x60] sm:$0xff] }
  0xd3   :  { %v1462_v32 = vadd.f32 %v1458_v62, %v1454_v63  ;;  %v1323_v38 = vadd.f32 0.045, %v1319_v47  ;;  %v1343_v33 = vmul.f32 %v1339_v45, %v695_v24  ;;  %v1415_v11 = vmul.f32 %v1411_v41, %v1379_v31 }
  0xd4   :  { %v1427_v21 = vmul.f32 %v1411_v41, %v1383_v58  ;;  %1513 = vst [vmem:[#allocation8 + $0x50] sm:$0xff] %v1491_v49  ;;  %v1407_v55 = vadd.f32 %v1403_v56, %v1399_v43  ;;  %v1493_v37 = vmul.f32 %v1725_v0, %v1464_v54  ;;  %v1465_v13 = vmul.f32 %v1461_v15, %v2362_v30  ;;  %v1599_v43 = vld [vmem:[#allocation3 + $0x68] sm:$0xff] }
  0xd5   :  { %v1466_v2 = vmul.f32 %v1462_v32, %v1362_v26  ;;  %v1347_v14 = vsub.f32 0.005625, %v1343_v33  ;;  %v1419_v5 = vsub.f32 %v52_v57, %v1415_v11  ;;  %v1327_v40 = vsub.f32 0.0, %v1323_v38 }
  0xd6   :  { %v1431_v25 = vsub.f32 %v58_v61, %v1427_v21  ;;  %v1497_v27 = vadd.f32 %v1598_v60, %v1493_v37  ;;  %v1494_v19 = vmul.f32 %v1725_v0, %v1465_v13  ;;  %v1335_v31 = vadd.f32 0.17, %v1331_v20 }
  0xd7   :  { %v1495_v48 = vmul.f32 %v1725_v0, %v1466_v2  ;;  %1589 = vrcp.f32 %v1347_v14  ;;  %v1423_v58 = vsub.f32 %v1419_v5, %v1395_v4 }
  0xd8   :  { %v1435_v7 = vsub.f32 %v1431_v25, %v1407_v55  ;;  %1516 = vst [vmem:[#allocation8 + $0x60] sm:$0xff] %v1497_v27  ;;  %v1498_v56 = vadd.f32 %v1599_v43, %v1494_v19 }
  0xd9   :  { %v1499_v30 = vadd.f32 %v1495_v48, %v2095_v8  ;;  %v1439_v29 = vmul.f32 0.045, %v1423_v58  ;;  %v1455_v42 = vmul.f32 %v1423_v58, %v1327_v40 }
  0xda   :  { %1517 = vst [vmem:[#allocation8 + $0x68] sm:$0xff] %v1498_v56  ;;  %v1443_v18 = vmul.f32 %v1435_v7, %v1327_v40  ;;  %v1459_v46 = vmul.f32 %v1435_v7, %v1335_v31 }
  0xdb   :  { %1518 = vst [vmem:[#allocation8 + $0x70] sm:$0xff] %v1499_v30 }
  0xdc   :  { %v1447_v26 = vadd.f32 %v1443_v18, %v1439_v29  ;;  %v1463_v59 = vadd.f32 %v1459_v46, %v1455_v42 }
  0xdd   :  { %v1590_v52 = vpop.eup %1589 }
  0xde   :  { %v1355_v50 = vmul.f32 %v1590_v52, %v1347_v14 }
  0xe0   :  { %v1359_v34 = vsub.f32 2.0, %v1355_v50 }
  0xe2   :  { %v1363_v36 = vmul.f32 %v1590_v52, %v1359_v34 }
  0xe4   :  { %v1451_v6 = vmul.f32 %v1447_v26, %v1363_v36  ;;  %v1467_v4 = vmul.f32 %v1463_v59, %v1363_v36 }
  0xe6   :  { %v1488_v35 = vmul.f32 %v1725_v0, %v1451_v6  ;;  %v1496_v17 = vmul.f32 %v1725_v0, %v1467_v4 }
  0xe8   :  { %v1492_v8 = vadd.f32 %v2393_v1, %v1488_v35  ;;  %v1500_v51 = vadd.f32 %v1496_v17, %v2216_v53 }
  0xea   :  { %1514 = vst [vmem:[#allocation8 + $0x58] sm:$0xff] %v1492_v8 }
  0xeb   :  { %1519 = vst [vmem:[#allocation8 + $0x78] sm:$0xff] %v1500_v51 }
  0xec   :  { %1532 = dma.vmem_to_hbm [thread:$0]  %s1525_s24, 2048, %s1527_s27, [#allocation5], %s1679_s20, %s1679_s20, %s1680_s21  }
  0xed   :  { %1676 = dma.done.wait [#allocation5], 2048  }
  0xee   :  { %1677 = vsyncadd [#allocation5], 4294965248 }
  0xef   :  { %1537 = vsyncpa [#allocation4], 1 }
  0xf0   :  { %1538 = vsyncpa [#allocation7], 1 }
  0xf1   :  { %1539 = vsyncpa [#allocation5], 1 }

</bundles_post_ra>
